<compile_context>
chip_gen: v5e
topology: v5e:2x2
jax: 0.10.0
libtpu: 0.0.40
codegen_flags: <defaults>
</compile_context>

<pallas_src>
import functools

import jax
import jax.numpy as jnp
from jax import lax
from jax.experimental import pallas as pl
from jax.experimental.pallas import tpu as pltpu


# ----------------------------------------------------------------------------
# Single fused Pallas kernel: embedding -> n bidirectional layers -> Linear
# ----------------------------------------------------------------------------
def _rnn_forward_kernel(ids_ref, emb_ref, *refs, seq_len, n_layers,
                        hidden_dim):
    """Fused forward.

    ids:(T*B, 1) int32 token ids (time-major, flattened).
    emb:(V, E) embedding table (padding_idx row already zero).
    Per layer l: w_ih:(Din_l, 2H) = [W_ih_fwd | W_ih_bwd], w_hh_f/w_hh_b:(H, H),
                 b:(1, 2H) = [b_ih_f + b_hh_f | b_ih_b + b_hh_b].
    fc_w:(2H, O), fc_b:(1, O).  Output o:(B, O) logits.
    Scratch: pre:(T*B, 2H) hoisted input projections; seq:(T*B, 2H) layer
             outputs (cols [:H] fwd, [H:] bwd, both in forward-time order).
    """
    layer_refs = refs[:4 * n_layers]
    fcw_ref, fcb_ref, o_ref, pre_ref, seq_ref = refs[4 * n_layers:]

    TB = pre_ref.shape[0]
    B = TB // seq_len
    H = hidden_dim
    V = emb_ref.shape[0]

    # ---- Embedding lookup as one MXU matmul (vocab is small) ---------------
    ids = ids_ref[...]                                            # (T*B, 1)
    onehot = (ids == lax.broadcasted_iota(jnp.int32, (TB, V), 1)
              ).astype(jnp.float32)                               # (T*B, V)
    x = jnp.dot(onehot, emb_ref[...],
                preferred_element_type=jnp.float32)               # (T*B, E)

    h_f = h_b = None
    for l in range(n_layers):
        w_ih_ref, whhf_ref, whhb_ref, b_ref = layer_refs[4 * l:4 * l + 4]
        last = (l == n_layers - 1)

        # Hoisted input projection for BOTH directions, bias folded in
        # (one big matmul per layer; read/broadcast bias once, not per step).
        layer_in = x if l == 0 else seq_ref[...]
        pre_ref[...] = (jnp.dot(layer_in, w_ih_ref[...],
                                preferred_element_type=jnp.float32)
                        + b_ref[...])

        w_hh_f = whhf_ref[...]
        w_hh_b = whhb_ref[...]
        h_f = jnp.zeros((B, H), jnp.float32)
        h_b = jnp.zeros((B, H), jnp.float32)

        # Statically unrolled recurrence: per step only the small h @ W_hh
        # matmuls; fwd/bwd chains are independent and overlap on the MXU.
        for t in range(seq_len):
            tb = seq_len - 1 - t                       # backward time index
            h_f = jnp.tanh(pre_ref[t * B:(t + 1) * B, :H]
                           + jnp.dot(h_f, w_hh_f,
                                     preferred_element_type=jnp.float32))
            h_b = jnp.tanh(pre_ref[tb * B:(tb + 1) * B, H:2 * H]
                           + jnp.dot(h_b, w_hh_b,
                                     preferred_element_type=jnp.float32))
            if not last:                               # last layer: skip seq out
                seq_ref[t * B:(t + 1) * B, :H] = h_f
                seq_ref[tb * B:(tb + 1) * B, H:2 * H] = h_b

    # hidden[-2] = final fwd h, hidden[-1] = final bwd h.  FC as two split
    # matmuls (avoids a lane-concat relayout):  [h_f | h_b] @ W_fc + b_fc.
    o_ref[...] = (jnp.dot(h_f, fcw_ref[:H, :],
                          preferred_element_type=jnp.float32)
                  + jnp.dot(h_b, fcw_ref[H:2 * H, :],
                            preferred_element_type=jnp.float32)
                  + fcb_ref[...])


# ----------------------------------------------------------------------------
# Wrapper: one pallas_call for the whole forward pass
# ----------------------------------------------------------------------------
_VMEM_SPEC = pl.BlockSpec(memory_space=pltpu.MemorySpace.VMEM)


def rnn_forward(params, text, text_lengths):
    # text: (T, B) int32 token ids.  text_lengths is unused — the PyTorch
    # forward also never packs the sequence.
    # TODO(synk): dropout is modeled as identity (eval mode); training-mode
    # masks would need pltpu.prng_* inside the kernel.
    del text_lengths
    T, B = text.shape
    layers = params["layers"]
    n_layers = len(layers)
    H = layers[0]["w_hh_f"].shape[0]
    O = params["fc_w"].shape[1]
    # The module's fc expects hidden_dim * n_layers inputs; the fused head
    # consumes concat(h_fwd, h_bwd) = 2H, which (as in PyTorch) only matches
    # when n_layers == 2.
    assert params["fc_w"].shape[0] == 2 * H

    ids = text.reshape(T * B, 1).astype(jnp.int32)
    flat_weights = []
    for layer in layers:
        flat_weights += [layer["w_ih"], layer["w_hh_f"], layer["w_hh_b"],
                         layer["b"]]

    kernel = functools.partial(_rnn_forward_kernel, seq_len=T,
                               n_layers=n_layers, hidden_dim=H)
    n_in = 2 + len(flat_weights) + 2
    return pl.pallas_call(
        kernel,
        out_shape=jax.ShapeDtypeStruct((B, O), jnp.float32),
        in_specs=[_VMEM_SPEC] * n_in,
        out_specs=_VMEM_SPEC,
        scratch_shapes=[pltpu.VMEM((T * B, 2 * H), jnp.float32),   # pre
                        pltpu.VMEM((T * B, 2 * H), jnp.float32)],  # seq
    )(ids, params["embedding"], *flat_weights, params["fc_w"], params["fc_b"])


# ----------------------------------------------------------------------------
# Parameter initialization (deterministic, PyTorch-like distributions)
# ----------------------------------------------------------------------------
def init_params(key, vocab_size, embedding_dim, hidden_dim, output_dim,
                n_layers, pad_idx):
    keys = iter(jax.random.split(key, 8 + 8 * n_layers))

    emb = jax.random.normal(next(keys), (vocab_size, embedding_dim),
                            jnp.float32)
    emb = emb.at[pad_idx].set(0.0)                     # padding_idx row is zero
    params = {"embedding": emb}

    k_rnn = 1.0 / jnp.sqrt(hidden_dim)
    layers = []
    for l in range(n_layers):
        in_dim = embedding_dim if l == 0 else 2 * hidden_dim
        w_ih_f = jax.random.uniform(next(keys), (in_dim, hidden_dim),
                                    jnp.float32, -k_rnn, k_rnn)
        w_ih_b = jax.random.uniform(next(keys), (in_dim, hidden_dim),
                                    jnp.float32, -k_rnn, k_rnn)
        w_hh_f = jax.random.uniform(next(keys), (hidden_dim, hidden_dim),
                                    jnp.float32, -k_rnn, k_rnn)
        w_hh_b = jax.random.uniform(next(keys), (hidden_dim, hidden_dim),
                                    jnp.float32, -k_rnn, k_rnn)
        b_f = (jax.random.uniform(next(keys), (hidden_dim,), jnp.float32,
                                  -k_rnn, k_rnn)
               + jax.random.uniform(next(keys), (hidden_dim,), jnp.float32,
                                    -k_rnn, k_rnn))   # b_ih + b_hh (fwd)
        b_b = (jax.random.uniform(next(keys), (hidden_dim,), jnp.float32,
                                  -k_rnn, k_rnn)
               + jax.random.uniform(next(keys), (hidden_dim,), jnp.float32,
                                    -k_rnn, k_rnn))   # b_ih + b_hh (bwd)
        layers.append({
            "w_ih": jnp.concatenate([w_ih_f, w_ih_b], axis=1),   # (Din, 2H)
            "w_hh_f": w_hh_f,
            "w_hh_b": w_hh_b,
            "b": jnp.concatenate([b_f, b_b]).reshape(1, 2 * hidden_dim),
        })
    params["layers"] = layers

    # Matches the module: nn.Linear(hidden_dim * n_layers, output_dim).
    fc_in = hidden_dim * n_layers
    k_fc = 1.0 / jnp.sqrt(fc_in)
    params["fc_w"] = jax.random.uniform(next(keys), (fc_in, output_dim),
                                        jnp.float32, -k_fc, k_fc)
    params["fc_b"] = jax.random.uniform(next(keys), (1, output_dim),
                                        jnp.float32, -k_fc, k_fc)
    return params


# ----------------------------------------------------------------------------
# Pure-JAX reference (for correctness check)
# ----------------------------------------------------------------------------
def rnn_forward_ref(params, text, text_lengths):
    del text_lengths
    x = params["embedding"][text]                      # (T, B, E)
    B = x.shape[1]
    h_f_last = h_b_last = None
    for layer in params["layers"]:
        H = layer["w_hh_f"].shape[0]
        w_ih, b = layer["w_ih"], layer["b"]

        def step_f(h, xt, w_ih=w_ih, b=b, w_hh=layer["w_hh_f"], H=H):
            h = jnp.tanh(xt @ w_ih[:, :H] + h @ w_hh + b[:, :H])
            return h, h

        def step_b(h, xt, w_ih=w_ih, b=b, w_hh=layer["w_hh_b"], H=H):
            h = jnp.tanh(xt @ w_ih[:, H:] + h @ w_hh + b[:, H:])
            return h, h

        h0 = jnp.zeros((B, H), jnp.float32)
        h_f_last, outs_f = lax.scan(step_f, h0, x)
        h_b_last, outs_b_rev = lax.scan(step_b, h0, x[::-1])
        x = jnp.concatenate([outs_f, outs_b_rev[::-1]], axis=-1)

    hidden = jnp.concatenate([h_f_last, h_b_last], axis=1)
    return hidden @ params["fc_w"] + params["fc_b"]


# ----------------------------------------------------------------------------
if __name__ == "__main__":
    VOCAB, EMB, HID, OUT = 50, 32, 32, 4
    N_LAYERS = 2          # fc expects hidden_dim * n_layers == 2 * hidden_dim
    PAD_IDX = 0
    T, B = 8, 2

    key = jax.random.PRNGKey(0)
    k_params, k_text = jax.random.split(key, 2)

    params = init_params(k_params, VOCAB, EMB, HID, OUT, N_LAYERS, PAD_IDX)
    text = jax.random.randint(k_text, (T, B), 1, VOCAB, dtype=jnp.int32)
    text_lengths = jnp.full((B,), T, dtype=jnp.int32)

    out = jax.block_until_ready(rnn_forward(params, text, text_lengths))
    ref = rnn_forward_ref(params, text, text_lengths)

    assert out.shape == (B, OUT), out.shape
    assert jnp.allclose(out, ref, rtol=1e-4, atol=1e-4), (
        f"max abs diff {jnp.max(jnp.abs(out - ref))}")

    print("KERNEL_OK")
</pallas_src>

<mosaic_0001>
module attributes {stable_mosaic.version = 11 : i64} {
  func.func @_rnn_forward_kernel(%arg0: memref<16x1xi32, #tpu.memory_space<vmem>>, %arg1: memref<50x32xf32, #tpu.memory_space<vmem>>, %arg2: memref<32x64xf32, #tpu.memory_space<vmem>>, %arg3: memref<32x32xf32, #tpu.memory_space<vmem>>, %arg4: memref<32x32xf32, #tpu.memory_space<vmem>>, %arg5: memref<1x64xf32, #tpu.memory_space<vmem>>, %arg6: memref<64x64xf32, #tpu.memory_space<vmem>>, %arg7: memref<32x32xf32, #tpu.memory_space<vmem>>, %arg8: memref<32x32xf32, #tpu.memory_space<vmem>>, %arg9: memref<1x64xf32, #tpu.memory_space<vmem>>, %arg10: memref<64x4xf32, #tpu.memory_space<vmem>>, %arg11: memref<1x4xf32, #tpu.memory_space<vmem>>, %arg12: memref<2x4xf32, #tpu.memory_space<vmem>>, %arg13: memref<16x64xf32, #tpu.memory_space<vmem>>, %arg14: memref<16x64xf32, #tpu.memory_space<vmem>>) attributes {dimension_semantics = [], scalar_prefetch = 0 : i64, scratch_operands = 2 : i64, tpu.core_type = #tpu.core_type<tc>} {
    %c0 = arith.constant 0 : index
    %c0_0 = arith.constant 0 : index
    %0 = vector.load %arg0[%c0, %c0_0] : memref<16x1xi32, #tpu.memory_space<vmem>>, vector<16x1xi32>
    %1 = tpu.iota {dimensions = array<i32: 1>} : vector<16x50xi32>
    %2 = vector.broadcast %0 : vector<16x1xi32> to vector<16x50xi32>
    %3 = arith.cmpi eq, %2, %1 : vector<16x50xi32>
    %4 = arith.extui %3 : vector<16x50xi1> to vector<16x50xi32>
    %5 = arith.sitofp %4 : vector<16x50xi32> to vector<16x50xf32>
    %c0_1 = arith.constant 0 : index
    %c0_2 = arith.constant 0 : index
    %6 = vector.load %arg1[%c0_1, %c0_2] : memref<50x32xf32, #tpu.memory_space<vmem>>, vector<50x32xf32>
    %cst = arith.constant dense<0.000000e+00> : vector<16x32xf32>
    %7 = tpu.matmul %5, %6, %cst {dimension_numbers = #tpu.dot_dimension_numbers<[1], [0], [0], [1], [0, 0, 1, 1], [], []>} : vector<16x50xf32>, vector<50x32xf32>, vector<16x32xf32> -> vector<16x32xf32>
    %c0_3 = arith.constant 0 : index
    %c0_4 = arith.constant 0 : index
    %8 = vector.load %arg2[%c0_3, %c0_4] : memref<32x64xf32, #tpu.memory_space<vmem>>, vector<32x64xf32>
    %cst_5 = arith.constant dense<0.000000e+00> : vector<16x64xf32>
    %9 = tpu.matmul %7, %8, %cst_5 {dimension_numbers = #tpu.dot_dimension_numbers<[1], [0], [0], [1], [0, 0, 1, 1], [], []>} : vector<16x32xf32>, vector<32x64xf32>, vector<16x64xf32> -> vector<16x64xf32>
    %c0_6 = arith.constant 0 : index
    %c0_7 = arith.constant 0 : index
    %10 = vector.load %arg5[%c0_6, %c0_7] : memref<1x64xf32, #tpu.memory_space<vmem>>, vector<1x64xf32>
    %11 = vector.broadcast %10 : vector<1x64xf32> to vector<16x64xf32>
    %12 = arith.addf %9, %11 : vector<16x64xf32>
    %c0_8 = arith.constant 0 : index
    %c0_9 = arith.constant 0 : index
    %13 = vector.load %arg13[%c0_8, %c0_9] : memref<16x64xf32, #tpu.memory_space<vmem>>, vector<16x64xf32>
    tpu.vector_store %arg13[%c0_8, %c0_9], %12 {strides = array<i32>} : memref<16x64xf32, #tpu.memory_space<vmem>>, vector<16x64xf32>,
    %c0_10 = arith.constant 0 : index
    %c0_11 = arith.constant 0 : index
    %14 = vector.load %arg3[%c0_10, %c0_11] : memref<32x32xf32, #tpu.memory_space<vmem>>, vector<32x32xf32>
    %c0_12 = arith.constant 0 : index
    %c0_13 = arith.constant 0 : index
    %15 = vector.load %arg4[%c0_12, %c0_13] : memref<32x32xf32, #tpu.memory_space<vmem>>, vector<32x32xf32>
    %cst_14 = arith.constant 0.000000e+00 : f32
    %16 = vector.broadcast %cst_14 : f32 to vector<2x32xf32>
    %cst_15 = arith.constant 0.000000e+00 : f32
    %17 = vector.broadcast %cst_15 : f32 to vector<2x32xf32>
    %c0_16 = arith.constant 0 : index
    %c0_17 = arith.constant 0 : index
    %18 = vector.load %arg13[%c0_16, %c0_17] : memref<16x64xf32, #tpu.memory_space<vmem>>, vector<2x32xf32>
    %cst_18 = arith.constant dense<0.000000e+00> : vector<2x32xf32>
    %19 = tpu.matmul %16, %14, %cst_18 {dimension_numbers = #tpu.dot_dimension_numbers<[1], [0], [0], [1], [0, 0, 1, 1], [], []>} : vector<2x32xf32>, vector<32x32xf32>, vector<2x32xf32> -> vector<2x32xf32>
    %20 = arith.addf %18, %19 : vector<2x32xf32>
    %21 = math.tanh %20 : vector<2x32xf32>
    %c14 = arith.constant 14 : index
    %c32 = arith.constant 32 : index
    %22 = vector.load %arg13[%c14, %c32] : memref<16x64xf32, #tpu.memory_space<vmem>>, vector<2x32xf32>
    %cst_19 = arith.constant dense<0.000000e+00> : vector<2x32xf32>
    %23 = tpu.matmul %17, %15, %cst_19 {dimension_numbers = #tpu.dot_dimension_numbers<[1], [0], [0], [1], [0, 0, 1, 1], [], []>} : vector<2x32xf32>, vector<32x32xf32>, vector<2x32xf32> -> vector<2x32xf32>
    %24 = arith.addf %22, %23 : vector<2x32xf32>
    %25 = math.tanh %24 : vector<2x32xf32>
    %c0_20 = arith.constant 0 : index
    %c0_21 = arith.constant 0 : index
    %26 = vector.load %arg14[%c0_20, %c0_21] : memref<16x64xf32, #tpu.memory_space<vmem>>, vector<2x32xf32>
    tpu.vector_store %arg14[%c0_20, %c0_21], %21 {strides = array<i32>} : memref<16x64xf32, #tpu.memory_space<vmem>>, vector<2x32xf32>,
    %c14_22 = arith.constant 14 : index
    %c32_23 = arith.constant 32 : index
    %27 = vector.load %arg14[%c14_22, %c32_23] : memref<16x64xf32, #tpu.memory_space<vmem>>, vector<2x32xf32>
    tpu.vector_store %arg14[%c14_22, %c32_23], %25 {strides = array<i32>} : memref<16x64xf32, #tpu.memory_space<vmem>>, vector<2x32xf32>,
    %c2 = arith.constant 2 : index
    %c0_24 = arith.constant 0 : index
    %28 = vector.load %arg13[%c2, %c0_24] : memref<16x64xf32, #tpu.memory_space<vmem>>, vector<2x32xf32>
    %cst_25 = arith.constant dense<0.000000e+00> : vector<2x32xf32>
    %29 = tpu.matmul %21, %14, %cst_25 {dimension_numbers = #tpu.dot_dimension_numbers<[1], [0], [0], [1], [0, 0, 1, 1], [], []>} : vector<2x32xf32>, vector<32x32xf32>, vector<2x32xf32> -> vector<2x32xf32>
    %30 = arith.addf %28, %29 : vector<2x32xf32>
    %31 = math.tanh %30 : vector<2x32xf32>
    %c12 = arith.constant 12 : index
    %c32_26 = arith.constant 32 : index
    %32 = vector.load %arg13[%c12, %c32_26] : memref<16x64xf32, #tpu.memory_space<vmem>>, vector<2x32xf32>
    %cst_27 = arith.constant dense<0.000000e+00> : vector<2x32xf32>
    %33 = tpu.matmul %25, %15, %cst_27 {dimension_numbers = #tpu.dot_dimension_numbers<[1], [0], [0], [1], [0, 0, 1, 1], [], []>} : vector<2x32xf32>, vector<32x32xf32>, vector<2x32xf32> -> vector<2x32xf32>
    %34 = arith.addf %32, %33 : vector<2x32xf32>
    %35 = math.tanh %34 : vector<2x32xf32>
    %c2_28 = arith.constant 2 : index
    %c0_29 = arith.constant 0 : index
    %36 = vector.load %arg14[%c2_28, %c0_29] : memref<16x64xf32, #tpu.memory_space<vmem>>, vector<2x32xf32>
    tpu.vector_store %arg14[%c2_28, %c0_29], %31 {strides = array<i32>} : memref<16x64xf32, #tpu.memory_space<vmem>>, vector<2x32xf32>,
    %c12_30 = arith.constant 12 : index
    %c32_31 = arith.constant 32 : index
    %37 = vector.load %arg14[%c12_30, %c32_31] : memref<16x64xf32, #tpu.memory_space<vmem>>, vector<2x32xf32>
    tpu.vector_store %arg14[%c12_30, %c32_31], %35 {strides = array<i32>} : memref<16x64xf32, #tpu.memory_space<vmem>>, vector<2x32xf32>,
    %c4 = arith.constant 4 : index
    %c0_32 = arith.constant 0 : index
    %38 = vector.load %arg13[%c4, %c0_32] : memref<16x64xf32, #tpu.memory_space<vmem>>, vector<2x32xf32>
    %cst_33 = arith.constant dense<0.000000e+00> : vector<2x32xf32>
    %39 = tpu.matmul %31, %14, %cst_33 {dimension_numbers = #tpu.dot_dimension_numbers<[1], [0], [0], [1], [0, 0, 1, 1], [], []>} : vector<2x32xf32>, vector<32x32xf32>, vector<2x32xf32> -> vector<2x32xf32>
    %40 = arith.addf %38, %39 : vector<2x32xf32>
    %41 = math.tanh %40 : vector<2x32xf32>
    %c10 = arith.constant 10 : index
    %c32_34 = arith.constant 32 : index
    %42 = vector.load %arg13[%c10, %c32_34] : memref<16x64xf32, #tpu.memory_space<vmem>>, vector<2x32xf32>
    %cst_35 = arith.constant dense<0.000000e+00> : vector<2x32xf32>
    %43 = tpu.matmul %35, %15, %cst_35 {dimension_numbers = #tpu.dot_dimension_numbers<[1], [0], [0], [1], [0, 0, 1, 1], [], []>} : vector<2x32xf32>, vector<32x32xf32>, vector<2x32xf32> -> vector<2x32xf32>
    %44 = arith.addf %42, %43 : vector<2x32xf32>
    %45 = math.tanh %44 : vector<2x32xf32>
    %c4_36 = arith.constant 4 : index
    %c0_37 = arith.constant 0 : index
    %46 = vector.load %arg14[%c4_36, %c0_37] : memref<16x64xf32, #tpu.memory_space<vmem>>, vector<2x32xf32>
    tpu.vector_store %arg14[%c4_36, %c0_37], %41 {strides = array<i32>} : memref<16x64xf32, #tpu.memory_space<vmem>>, vector<2x32xf32>,
    %c10_38 = arith.constant 10 : index
    %c32_39 = arith.constant 32 : index
    %47 = vector.load %arg14[%c10_38, %c32_39] : memref<16x64xf32, #tpu.memory_space<vmem>>, vector<2x32xf32>
    tpu.vector_store %arg14[%c10_38, %c32_39], %45 {strides = array<i32>} : memref<16x64xf32, #tpu.memory_space<vmem>>, vector<2x32xf32>,
    %c6 = arith.constant 6 : index
    %c0_40 = arith.constant 0 : index
    %48 = vector.load %arg13[%c6, %c0_40] : memref<16x64xf32, #tpu.memory_space<vmem>>, vector<2x32xf32>
    %cst_41 = arith.constant dense<0.000000e+00> : vector<2x32xf32>
    %49 = tpu.matmul %41, %14, %cst_41 {dimension_numbers = #tpu.dot_dimension_numbers<[1], [0], [0], [1], [0, 0, 1, 1], [], []>} : vector<2x32xf32>, vector<32x32xf32>, vector<2x32xf32> -> vector<2x32xf32>
    %50 = arith.addf %48, %49 : vector<2x32xf32>
    %51 = math.tanh %50 : vector<2x32xf32>
    %c8 = arith.constant 8 : index
    %c32_42 = arith.constant 32 : index
    %52 = vector.load %arg13[%c8, %c32_42] : memref<16x64xf32, #tpu.memory_space<vmem>>, vector<2x32xf32>
    %cst_43 = arith.constant dense<0.000000e+00> : vector<2x32xf32>
    %53 = tpu.matmul %45, %15, %cst_43 {dimension_numbers = #tpu.dot_dimension_numbers<[1], [0], [0], [1], [0, 0, 1, 1], [], []>} : vector<2x32xf32>, vector<32x32xf32>, vector<2x32xf32> -> vector<2x32xf32>
    %54 = arith.addf %52, %53 : vector<2x32xf32>
    %55 = math.tanh %54 : vector<2x32xf32>
    %c6_44 = arith.constant 6 : index
    %c0_45 = arith.constant 0 : index
    %56 = vector.load %arg14[%c6_44, %c0_45] : memref<16x64xf32, #tpu.memory_space<vmem>>, vector<2x32xf32>
    tpu.vector_store %arg14[%c6_44, %c0_45], %51 {strides = array<i32>} : memref<16x64xf32, #tpu.memory_space<vmem>>, vector<2x32xf32>,
    %c8_46 = arith.constant 8 : index
    %c32_47 = arith.constant 32 : index
    %57 = vector.load %arg14[%c8_46, %c32_47] : memref<16x64xf32, #tpu.memory_space<vmem>>, vector<2x32xf32>
    tpu.vector_store %arg14[%c8_46, %c32_47], %55 {strides = array<i32>} : memref<16x64xf32, #tpu.memory_space<vmem>>, vector<2x32xf32>,
    %c8_48 = arith.constant 8 : index
    %c0_49 = arith.constant 0 : index
    %58 = vector.load %arg13[%c8_48, %c0_49] : memref<16x64xf32, #tpu.memory_space<vmem>>, vector<2x32xf32>
    %cst_50 = arith.constant dense<0.000000e+00> : vector<2x32xf32>
    %59 = tpu.matmul %51, %14, %cst_50 {dimension_numbers = #tpu.dot_dimension_numbers<[1], [0], [0], [1], [0, 0, 1, 1], [], []>} : vector<2x32xf32>, vector<32x32xf32>, vector<2x32xf32> -> vector<2x32xf32>
    %60 = arith.addf %58, %59 : vector<2x32xf32>
    %61 = math.tanh %60 : vector<2x32xf32>
    %c6_51 = arith.constant 6 : index
    %c32_52 = arith.constant 32 : index
    %62 = vector.load %arg13[%c6_51, %c32_52] : memref<16x64xf32, #tpu.memory_space<vmem>>, vector<2x32xf32>
    %cst_53 = arith.constant dense<0.000000e+00> : vector<2x32xf32>
    %63 = tpu.matmul %55, %15, %cst_53 {dimension_numbers = #tpu.dot_dimension_numbers<[1], [0], [0], [1], [0, 0, 1, 1], [], []>} : vector<2x32xf32>, vector<32x32xf32>, vector<2x32xf32> -> vector<2x32xf32>
    %64 = arith.addf %62, %63 : vector<2x32xf32>
    %65 = math.tanh %64 : vector<2x32xf32>
    %c8_54 = arith.constant 8 : index
    %c0_55 = arith.constant 0 : index
    %66 = vector.load %arg14[%c8_54, %c0_55] : memref<16x64xf32, #tpu.memory_space<vmem>>, vector<2x32xf32>
    tpu.vector_store %arg14[%c8_54, %c0_55], %61 {strides = array<i32>} : memref<16x64xf32, #tpu.memory_space<vmem>>, vector<2x32xf32>,
    %c6_56 = arith.constant 6 : index
    %c32_57 = arith.constant 32 : index
    %67 = vector.load %arg14[%c6_56, %c32_57] : memref<16x64xf32, #tpu.memory_space<vmem>>, vector<2x32xf32>
    tpu.vector_store %arg14[%c6_56, %c32_57], %65 {strides = array<i32>} : memref<16x64xf32, #tpu.memory_space<vmem>>, vector<2x32xf32>,
    %c10_58 = arith.constant 10 : index
    %c0_59 = arith.constant 0 : index
    %68 = vector.load %arg13[%c10_58, %c0_59] : memref<16x64xf32, #tpu.memory_space<vmem>>, vector<2x32xf32>
    %cst_60 = arith.constant dense<0.000000e+00> : vector<2x32xf32>
    %69 = tpu.matmul %61, %14, %cst_60 {dimension_numbers = #tpu.dot_dimension_numbers<[1], [0], [0], [1], [0, 0, 1, 1], [], []>} : vector<2x32xf32>, vector<32x32xf32>, vector<2x32xf32> -> vector<2x32xf32>
    %70 = arith.addf %68, %69 : vector<2x32xf32>
    %71 = math.tanh %70 : vector<2x32xf32>
    %c4_61 = arith.constant 4 : index
    %c32_62 = arith.constant 32 : index
    %72 = vector.load %arg13[%c4_61, %c32_62] : memref<16x64xf32, #tpu.memory_space<vmem>>, vector<2x32xf32>
    %cst_63 = arith.constant dense<0.000000e+00> : vector<2x32xf32>
    %73 = tpu.matmul %65, %15, %cst_63 {dimension_numbers = #tpu.dot_dimension_numbers<[1], [0], [0], [1], [0, 0, 1, 1], [], []>} : vector<2x32xf32>, vector<32x32xf32>, vector<2x32xf32> -> vector<2x32xf32>
    %74 = arith.addf %72, %73 : vector<2x32xf32>
    %75 = math.tanh %74 : vector<2x32xf32>
    %c10_64 = arith.constant 10 : index
    %c0_65 = arith.constant 0 : index
    %76 = vector.load %arg14[%c10_64, %c0_65] : memref<16x64xf32, #tpu.memory_space<vmem>>, vector<2x32xf32>
    tpu.vector_store %arg14[%c10_64, %c0_65], %71 {strides = array<i32>} : memref<16x64xf32, #tpu.memory_space<vmem>>, vector<2x32xf32>,
    %c4_66 = arith.constant 4 : index
    %c32_67 = arith.constant 32 : index
    %77 = vector.load %arg14[%c4_66, %c32_67] : memref<16x64xf32, #tpu.memory_space<vmem>>, vector<2x32xf32>
    tpu.vector_store %arg14[%c4_66, %c32_67], %75 {strides = array<i32>} : memref<16x64xf32, #tpu.memory_space<vmem>>, vector<2x32xf32>,
    %c12_68 = arith.constant 12 : index
    %c0_69 = arith.constant 0 : index
    %78 = vector.load %arg13[%c12_68, %c0_69] : memref<16x64xf32, #tpu.memory_space<vmem>>, vector<2x32xf32>
    %cst_70 = arith.constant dense<0.000000e+00> : vector<2x32xf32>
    %79 = tpu.matmul %71, %14, %cst_70 {dimension_numbers = #tpu.dot_dimension_numbers<[1], [0], [0], [1], [0, 0, 1, 1], [], []>} : vector<2x32xf32>, vector<32x32xf32>, vector<2x32xf32> -> vector<2x32xf32>
    %80 = arith.addf %78, %79 : vector<2x32xf32>
    %81 = math.tanh %80 : vector<2x32xf32>
    %c2_71 = arith.constant 2 : index
    %c32_72 = arith.constant 32 : index
    %82 = vector.load %arg13[%c2_71, %c32_72] : memref<16x64xf32, #tpu.memory_space<vmem>>, vector<2x32xf32>
    %cst_73 = arith.constant dense<0.000000e+00> : vector<2x32xf32>
    %83 = tpu.matmul %75, %15, %cst_73 {dimension_numbers = #tpu.dot_dimension_numbers<[1], [0], [0], [1], [0, 0, 1, 1], [], []>} : vector<2x32xf32>, vector<32x32xf32>, vector<2x32xf32> -> vector<2x32xf32>
    %84 = arith.addf %82, %83 : vector<2x32xf32>
    %85 = math.tanh %84 : vector<2x32xf32>
    %c12_74 = arith.constant 12 : index
    %c0_75 = arith.constant 0 : index
    %86 = vector.load %arg14[%c12_74, %c0_75] : memref<16x64xf32, #tpu.memory_space<vmem>>, vector<2x32xf32>
    tpu.vector_store %arg14[%c12_74, %c0_75], %81 {strides = array<i32>} : memref<16x64xf32, #tpu.memory_space<vmem>>, vector<2x32xf32>,
    %c2_76 = arith.constant 2 : index
    %c32_77 = arith.constant 32 : index
    %87 = vector.load %arg14[%c2_76, %c32_77] : memref<16x64xf32, #tpu.memory_space<vmem>>, vector<2x32xf32>
    tpu.vector_store %arg14[%c2_76, %c32_77], %85 {strides = array<i32>} : memref<16x64xf32, #tpu.memory_space<vmem>>, vector<2x32xf32>,
    %c14_78 = arith.constant 14 : index
    %c0_79 = arith.constant 0 : index
    %88 = vector.load %arg13[%c14_78, %c0_79] : memref<16x64xf32, #tpu.memory_space<vmem>>, vector<2x32xf32>
    %cst_80 = arith.constant dense<0.000000e+00> : vector<2x32xf32>
    %89 = tpu.matmul %81, %14, %cst_80 {dimension_numbers = #tpu.dot_dimension_numbers<[1], [0], [0], [1], [0, 0, 1, 1], [], []>} : vector<2x32xf32>, vector<32x32xf32>, vector<2x32xf32> -> vector<2x32xf32>
    %90 = arith.addf %88, %89 : vector<2x32xf32>
    %91 = math.tanh %90 : vector<2x32xf32>
    %c0_81 = arith.constant 0 : index
    %c32_82 = arith.constant 32 : index
    %92 = vector.load %arg13[%c0_81, %c32_82] : memref<16x64xf32, #tpu.memory_space<vmem>>, vector<2x32xf32>
    %cst_83 = arith.constant dense<0.000000e+00> : vector<2x32xf32>
    %93 = tpu.matmul %85, %15, %cst_83 {dimension_numbers = #tpu.dot_dimension_numbers<[1], [0], [0], [1], [0, 0, 1, 1], [], []>} : vector<2x32xf32>, vector<32x32xf32>, vector<2x32xf32> -> vector<2x32xf32>
    %94 = arith.addf %92, %93 : vector<2x32xf32>
    %95 = math.tanh %94 : vector<2x32xf32>
    %c14_84 = arith.constant 14 : index
    %c0_85 = arith.constant 0 : index
    %96 = vector.load %arg14[%c14_84, %c0_85] : memref<16x64xf32, #tpu.memory_space<vmem>>, vector<2x32xf32>
    tpu.vector_store %arg14[%c14_84, %c0_85], %91 {strides = array<i32>} : memref<16x64xf32, #tpu.memory_space<vmem>>, vector<2x32xf32>,
    %c0_86 = arith.constant 0 : index
    %c32_87 = arith.constant 32 : index
    %97 = vector.load %arg14[%c0_86, %c32_87] : memref<16x64xf32, #tpu.memory_space<vmem>>, vector<2x32xf32>
    tpu.vector_store %arg14[%c0_86, %c32_87], %95 {strides = array<i32>} : memref<16x64xf32, #tpu.memory_space<vmem>>, vector<2x32xf32>,
    %c0_88 = arith.constant 0 : index
    %c0_89 = arith.constant 0 : index
    %98 = vector.load %arg14[%c0_88, %c0_89] : memref<16x64xf32, #tpu.memory_space<vmem>>, vector<16x64xf32>
    %c0_90 = arith.constant 0 : index
    %c0_91 = arith.constant 0 : index
    %99 = vector.load %arg6[%c0_90, %c0_91] : memref<64x64xf32, #tpu.memory_space<vmem>>, vector<64x64xf32>
    %cst_92 = arith.constant dense<0.000000e+00> : vector<16x64xf32>
    %100 = tpu.matmul %98, %99, %cst_92 {dimension_numbers = #tpu.dot_dimension_numbers<[1], [0], [0], [1], [0, 0, 1, 1], [], []>} : vector<16x64xf32>, vector<64x64xf32>, vector<16x64xf32> -> vector<16x64xf32>
    %c0_93 = arith.constant 0 : index
    %c0_94 = arith.constant 0 : index
    %101 = vector.load %arg9[%c0_93, %c0_94] : memref<1x64xf32, #tpu.memory_space<vmem>>, vector<1x64xf32>
    %102 = vector.broadcast %101 : vector<1x64xf32> to vector<16x64xf32>
    %103 = arith.addf %100, %102 : vector<16x64xf32>
    %c0_95 = arith.constant 0 : index
    %c0_96 = arith.constant 0 : index
    %104 = vector.load %arg13[%c0_95, %c0_96] : memref<16x64xf32, #tpu.memory_space<vmem>>, vector<16x64xf32>
    tpu.vector_store %arg13[%c0_95, %c0_96], %103 {strides = array<i32>} : memref<16x64xf32, #tpu.memory_space<vmem>>, vector<16x64xf32>,
    %c0_97 = arith.constant 0 : index
    %c0_98 = arith.constant 0 : index
    %105 = vector.load %arg7[%c0_97, %c0_98] : memref<32x32xf32, #tpu.memory_space<vmem>>, vector<32x32xf32>
    %c0_99 = arith.constant 0 : index
    %c0_100 = arith.constant 0 : index
    %106 = vector.load %arg8[%c0_99, %c0_100] : memref<32x32xf32, #tpu.memory_space<vmem>>, vector<32x32xf32>
    %cst_101 = arith.constant 0.000000e+00 : f32
    %107 = vector.broadcast %cst_101 : f32 to vector<2x32xf32>
    %cst_102 = arith.constant 0.000000e+00 : f32
    %108 = vector.broadcast %cst_102 : f32 to vector<2x32xf32>
    %c0_103 = arith.constant 0 : index
    %c0_104 = arith.constant 0 : index
    %109 = vector.load %arg13[%c0_103, %c0_104] : memref<16x64xf32, #tpu.memory_space<vmem>>, vector<2x32xf32>
    %cst_105 = arith.constant dense<0.000000e+00> : vector<2x32xf32>
    %110 = tpu.matmul %107, %105, %cst_105 {dimension_numbers = #tpu.dot_dimension_numbers<[1], [0], [0], [1], [0, 0, 1, 1], [], []>} : vector<2x32xf32>, vector<32x32xf32>, vector<2x32xf32> -> vector<2x32xf32>
    %111 = arith.addf %109, %110 : vector<2x32xf32>
    %112 = math.tanh %111 : vector<2x32xf32>
    %c14_106 = arith.constant 14 : index
    %c32_107 = arith.constant 32 : index
    %113 = vector.load %arg13[%c14_106, %c32_107] : memref<16x64xf32, #tpu.memory_space<vmem>>, vector<2x32xf32>
    %cst_108 = arith.constant dense<0.000000e+00> : vector<2x32xf32>
    %114 = tpu.matmul %108, %106, %cst_108 {dimension_numbers = #tpu.dot_dimension_numbers<[1], [0], [0], [1], [0, 0, 1, 1], [], []>} : vector<2x32xf32>, vector<32x32xf32>, vector<2x32xf32> -> vector<2x32xf32>
    %115 = arith.addf %113, %114 : vector<2x32xf32>
    %116 = math.tanh %115 : vector<2x32xf32>
    %c2_109 = arith.constant 2 : index
    %c0_110 = arith.constant 0 : index
    %117 = vector.load %arg13[%c2_109, %c0_110] : memref<16x64xf32, #tpu.memory_space<vmem>>, vector<2x32xf32>
    %cst_111 = arith.constant dense<0.000000e+00> : vector<2x32xf32>
    %118 = tpu.matmul %112, %105, %cst_111 {dimension_numbers = #tpu.dot_dimension_numbers<[1], [0], [0], [1], [0, 0, 1, 1], [], []>} : vector<2x32xf32>, vector<32x32xf32>, vector<2x32xf32> -> vector<2x32xf32>
    %119 = arith.addf %117, %118 : vector<2x32xf32>
    %120 = math.tanh %119 : vector<2x32xf32>
    %c12_112 = arith.constant 12 : index
    %c32_113 = arith.constant 32 : index
    %121 = vector.load %arg13[%c12_112, %c32_113] : memref<16x64xf32, #tpu.memory_space<vmem>>, vector<2x32xf32>
    %cst_114 = arith.constant dense<0.000000e+00> : vector<2x32xf32>
    %122 = tpu.matmul %116, %106, %cst_114 {dimension_numbers = #tpu.dot_dimension_numbers<[1], [0], [0], [1], [0, 0, 1, 1], [], []>} : vector<2x32xf32>, vector<32x32xf32>, vector<2x32xf32> -> vector<2x32xf32>
    %123 = arith.addf %121, %122 : vector<2x32xf32>
    %124 = math.tanh %123 : vector<2x32xf32>
    %c4_115 = arith.constant 4 : index
    %c0_116 = arith.constant 0 : index
    %125 = vector.load %arg13[%c4_115, %c0_116] : memref<16x64xf32, #tpu.memory_space<vmem>>, vector<2x32xf32>
    %cst_117 = arith.constant dense<0.000000e+00> : vector<2x32xf32>
    %126 = tpu.matmul %120, %105, %cst_117 {dimension_numbers = #tpu.dot_dimension_numbers<[1], [0], [0], [1], [0, 0, 1, 1], [], []>} : vector<2x32xf32>, vector<32x32xf32>, vector<2x32xf32> -> vector<2x32xf32>
    %127 = arith.addf %125, %126 : vector<2x32xf32>
    %128 = math.tanh %127 : vector<2x32xf32>
    %c10_118 = arith.constant 10 : index
    %c32_119 = arith.constant 32 : index
    %129 = vector.load %arg13[%c10_118, %c32_119] : memref<16x64xf32, #tpu.memory_space<vmem>>, vector<2x32xf32>
    %cst_120 = arith.constant dense<0.000000e+00> : vector<2x32xf32>
    %130 = tpu.matmul %124, %106, %cst_120 {dimension_numbers = #tpu.dot_dimension_numbers<[1], [0], [0], [1], [0, 0, 1, 1], [], []>} : vector<2x32xf32>, vector<32x32xf32>, vector<2x32xf32> -> vector<2x32xf32>
    %131 = arith.addf %129, %130 : vector<2x32xf32>
    %132 = math.tanh %131 : vector<2x32xf32>
    %c6_121 = arith.constant 6 : index
    %c0_122 = arith.constant 0 : index
    %133 = vector.load %arg13[%c6_121, %c0_122] : memref<16x64xf32, #tpu.memory_space<vmem>>, vector<2x32xf32>
    %cst_123 = arith.constant dense<0.000000e+00> : vector<2x32xf32>
    %134 = tpu.matmul %128, %105, %cst_123 {dimension_numbers = #tpu.dot_dimension_numbers<[1], [0], [0], [1], [0, 0, 1, 1], [], []>} : vector<2x32xf32>, vector<32x32xf32>, vector<2x32xf32> -> vector<2x32xf32>
    %135 = arith.addf %133, %134 : vector<2x32xf32>
    %136 = math.tanh %135 : vector<2x32xf32>
    %c8_124 = arith.constant 8 : index
    %c32_125 = arith.constant 32 : index
    %137 = vector.load %arg13[%c8_124, %c32_125] : memref<16x64xf32, #tpu.memory_space<vmem>>, vector<2x32xf32>
    %cst_126 = arith.constant dense<0.000000e+00> : vector<2x32xf32>
    %138 = tpu.matmul %132, %106, %cst_126 {dimension_numbers = #tpu.dot_dimension_numbers<[1], [0], [0], [1], [0, 0, 1, 1], [], []>} : vector<2x32xf32>, vector<32x32xf32>, vector<2x32xf32> -> vector<2x32xf32>
    %139 = arith.addf %137, %138 : vector<2x32xf32>
    %140 = math.tanh %139 : vector<2x32xf32>
    %c8_127 = arith.constant 8 : index
    %c0_128 = arith.constant 0 : index
    %141 = vector.load %arg13[%c8_127, %c0_128] : memref<16x64xf32, #tpu.memory_space<vmem>>, vector<2x32xf32>
    %cst_129 = arith.constant dense<0.000000e+00> : vector<2x32xf32>
    %142 = tpu.matmul %136, %105, %cst_129 {dimension_numbers = #tpu.dot_dimension_numbers<[1], [0], [0], [1], [0, 0, 1, 1], [], []>} : vector<2x32xf32>, vector<32x32xf32>, vector<2x32xf32> -> vector<2x32xf32>
    %143 = arith.addf %141, %142 : vector<2x32xf32>
    %144 = math.tanh %143 : vector<2x32xf32>
    %c6_130 = arith.constant 6 : index
    %c32_131 = arith.constant 32 : index
    %145 = vector.load %arg13[%c6_130, %c32_131] : memref<16x64xf32, #tpu.memory_space<vmem>>, vector<2x32xf32>
    %cst_132 = arith.constant dense<0.000000e+00> : vector<2x32xf32>
    %146 = tpu.matmul %140, %106, %cst_132 {dimension_numbers = #tpu.dot_dimension_numbers<[1], [0], [0], [1], [0, 0, 1, 1], [], []>} : vector<2x32xf32>, vector<32x32xf32>, vector<2x32xf32> -> vector<2x32xf32>
    %147 = arith.addf %145, %146 : vector<2x32xf32>
    %148 = math.tanh %147 : vector<2x32xf32>
    %c10_133 = arith.constant 10 : index
    %c0_134 = arith.constant 0 : index
    %149 = vector.load %arg13[%c10_133, %c0_134] : memref<16x64xf32, #tpu.memory_space<vmem>>, vector<2x32xf32>
    %cst_135 = arith.constant dense<0.000000e+00> : vector<2x32xf32>
    %150 = tpu.matmul %144, %105, %cst_135 {dimension_numbers = #tpu.dot_dimension_numbers<[1], [0], [0], [1], [0, 0, 1, 1], [], []>} : vector<2x32xf32>, vector<32x32xf32>, vector<2x32xf32> -> vector<2x32xf32>
    %151 = arith.addf %149, %150 : vector<2x32xf32>
    %152 = math.tanh %151 : vector<2x32xf32>
    %c4_136 = arith.constant 4 : index
    %c32_137 = arith.constant 32 : index
    %153 = vector.load %arg13[%c4_136, %c32_137] : memref<16x64xf32, #tpu.memory_space<vmem>>, vector<2x32xf32>
    %cst_138 = arith.constant dense<0.000000e+00> : vector<2x32xf32>
    %154 = tpu.matmul %148, %106, %cst_138 {dimension_numbers = #tpu.dot_dimension_numbers<[1], [0], [0], [1], [0, 0, 1, 1], [], []>} : vector<2x32xf32>, vector<32x32xf32>, vector<2x32xf32> -> vector<2x32xf32>
    %155 = arith.addf %153, %154 : vector<2x32xf32>
    %156 = math.tanh %155 : vector<2x32xf32>
    %c12_139 = arith.constant 12 : index
    %c0_140 = arith.constant 0 : index
    %157 = vector.load %arg13[%c12_139, %c0_140] : memref<16x64xf32, #tpu.memory_space<vmem>>, vector<2x32xf32>
    %cst_141 = arith.constant dense<0.000000e+00> : vector<2x32xf32>
    %158 = tpu.matmul %152, %105, %cst_141 {dimension_numbers = #tpu.dot_dimension_numbers<[1], [0], [0], [1], [0, 0, 1, 1], [], []>} : vector<2x32xf32>, vector<32x32xf32>, vector<2x32xf32> -> vector<2x32xf32>
    %159 = arith.addf %157, %158 : vector<2x32xf32>
    %160 = math.tanh %159 : vector<2x32xf32>
    %c2_142 = arith.constant 2 : index
    %c32_143 = arith.constant 32 : index
    %161 = vector.load %arg13[%c2_142, %c32_143] : memref<16x64xf32, #tpu.memory_space<vmem>>, vector<2x32xf32>
    %cst_144 = arith.constant dense<0.000000e+00> : vector<2x32xf32>
    %162 = tpu.matmul %156, %106, %cst_144 {dimension_numbers = #tpu.dot_dimension_numbers<[1], [0], [0], [1], [0, 0, 1, 1], [], []>} : vector<2x32xf32>, vector<32x32xf32>, vector<2x32xf32> -> vector<2x32xf32>
    %163 = arith.addf %161, %162 : vector<2x32xf32>
    %164 = math.tanh %163 : vector<2x32xf32>
    %c14_145 = arith.constant 14 : index
    %c0_146 = arith.constant 0 : index
    %165 = vector.load %arg13[%c14_145, %c0_146] : memref<16x64xf32, #tpu.memory_space<vmem>>, vector<2x32xf32>
    %cst_147 = arith.constant dense<0.000000e+00> : vector<2x32xf32>
    %166 = tpu.matmul %160, %105, %cst_147 {dimension_numbers = #tpu.dot_dimension_numbers<[1], [0], [0], [1], [0, 0, 1, 1], [], []>} : vector<2x32xf32>, vector<32x32xf32>, vector<2x32xf32> -> vector<2x32xf32>
    %167 = arith.addf %165, %166 : vector<2x32xf32>
    %168 = math.tanh %167 : vector<2x32xf32>
    %c0_148 = arith.constant 0 : index
    %c32_149 = arith.constant 32 : index
    %169 = vector.load %arg13[%c0_148, %c32_149] : memref<16x64xf32, #tpu.memory_space<vmem>>, vector<2x32xf32>
    %cst_150 = arith.constant dense<0.000000e+00> : vector<2x32xf32>
    %170 = tpu.matmul %164, %106, %cst_150 {dimension_numbers = #tpu.dot_dimension_numbers<[1], [0], [0], [1], [0, 0, 1, 1], [], []>} : vector<2x32xf32>, vector<32x32xf32>, vector<2x32xf32> -> vector<2x32xf32>
    %171 = arith.addf %169, %170 : vector<2x32xf32>
    %172 = math.tanh %171 : vector<2x32xf32>
    %c0_151 = arith.constant 0 : index
    %c0_152 = arith.constant 0 : index
    %173 = vector.load %arg10[%c0_151, %c0_152] : memref<64x4xf32, #tpu.memory_space<vmem>>, vector<32x4xf32>
    %cst_153 = arith.constant dense<0.000000e+00> : vector<2x4xf32>
    %174 = tpu.matmul %168, %173, %cst_153 {dimension_numbers = #tpu.dot_dimension_numbers<[1], [0], [0], [1], [0, 0, 1, 1], [], []>} : vector<2x32xf32>, vector<32x4xf32>, vector<2x4xf32> -> vector<2x4xf32>
    %c32_154 = arith.constant 32 : index
    %c0_155 = arith.constant 0 : index
    %175 = vector.load %arg10[%c32_154, %c0_155] : memref<64x4xf32, #tpu.memory_space<vmem>>, vector<32x4xf32>
    %cst_156 = arith.constant dense<0.000000e+00> : vector<2x4xf32>
    %176 = tpu.matmul %172, %175, %cst_156 {dimension_numbers = #tpu.dot_dimension_numbers<[1], [0], [0], [1], [0, 0, 1, 1], [], []>} : vector<2x32xf32>, vector<32x4xf32>, vector<2x4xf32> -> vector<2x4xf32>
    %177 = arith.addf %174, %176 : vector<2x4xf32>
    %c0_157 = arith.constant 0 : index
    %c0_158 = arith.constant 0 : index
    %178 = vector.load %arg11[%c0_157, %c0_158] : memref<1x4xf32, #tpu.memory_space<vmem>>, vector<1x4xf32>
    %179 = vector.broadcast %178 : vector<1x4xf32> to vector<2x4xf32>
    %180 = arith.addf %177, %179 : vector<2x4xf32>
    %c0_159 = arith.constant 0 : index
    %c0_160 = arith.constant 0 : index
    %181 = vector.load %arg12[%c0_159, %c0_160] : memref<2x4xf32, #tpu.memory_space<vmem>>, vector<2x4xf32>
    tpu.vector_store %arg12[%c0_159, %c0_160], %180 {strides = array<i32>} : memref<2x4xf32, #tpu.memory_space<vmem>>, vector<2x4xf32>,
    return
  }
}

</mosaic_0001>

<bundles_post_ra>
// kernel: tpu_custom_call.1
= control target key start
LH: loop header
LB: loop body
LE: loop exit
PB: predicated region body
PF: predicated region fallthrough
CT: control target
= control target key end

     0   :  { %17 = vsyncpa [#allocation5], 0  ;;  %s1903_s0 = inlined_call_operand.vmem [shape: s32[16,1], index: 0, kind: input, shape index: {}]   ;;  %s1904_s1 = inlined_call_operand.vmem [shape: f32[50,32], index: 1, kind: input, shape index: {}]   ;;  %s1905_s2 = inlined_call_operand.vmem [shape: f32[32,64], index: 2, kind: input, shape index: {}]   ;;  %s1906_s3 = inlined_call_operand.vmem [shape: f32[32,32], index: 3, kind: input, shape index: {}]   ;;  %s1907_s4 = inlined_call_operand.vmem [shape: f32[32,32], index: 4, kind: input, shape index: {}]   ;;  %s1908_s5 = inlined_call_operand.vmem [shape: f32[1,64], index: 5, kind: input, shape index: {}]   ;;  %s1909_s6 = inlined_call_operand.vmem [shape: f32[64,64], index: 6, kind: input, shape index: {}]   ;;  %s1910_s7 = inlined_call_operand.hbm [shape: f32[32,32], index: 7, kind: input, shape index: {}]   ;;  %s1911_s8 = inlined_call_operand.hbm [shape: f32[32,32], index: 8, kind: input, shape index: {}]   ;;  %s1912_s9 = inlined_call_operand.vmem [shape: f32[1,64], index: 9, kind: input, shape index: {}]   ;;  %s1913_s10 = inlined_call_operand.vmem [shape: f32[64,4], index: 10, kind: input, shape index: {}]   ;;  %s1914_s11 = inlined_call_operand.vmem [shape: f32[1,4], index: 11, kind: input, shape index: {}]   ;;  %s1915_s12 = inlined_call_operand.hbm [shape: f32[2,4], index: 12, kind: output, shape index: {}]  }
   0x1   :  { %18 = vsyncpa [#allocation8], 0 }
   0x2   :  { %19 = vsyncpa [#allocation6], 0  ;;  %s38_s23 = sshll.u32 %s1910_s7, 4  ;;  %s1433_s24 = smov [#allocation4]   ;;  %s39_s23 = int_to_ptr.hbm [resolvable:$true] %s38_s23 }
   0x3   :  { %s40_s25 = sshll.u32 %s1433_s24, 4  ;;  %s51_s28 = sshll.u32 %s1911_s8, 4  ;;  %s41_s25 = int_to_ptr.vmem [resolvable:$true] %s40_s25  ;;  %s52_s28 = int_to_ptr.hbm [resolvable:$true] %s51_s28 }
   0x4   :  { %s1434_s29 = smov 128   ;;  %s1435_s30 = smov 8  }
   0x5   :  { %46 = dma.hbm_to_vmem [thread:$0]  %s39_s23, 512, %s41_s25, [#allocation5], %s1434_s29, %s1434_s29, %s1435_s30  }
   0x6   :  { %s1436_s13 = smov [#allocation7]  }
   0x7   :  { %s53_s14 = sshll.u32 %s1436_s13, 4  ;;  %s54_s14 = int_to_ptr.vmem [resolvable:$true] %s53_s14 }
   0x8   :  { %59 = dma.hbm_to_vmem [thread:$0]  %s52_s28, 512, %s54_s14, [#allocation8], %s1434_s29, %s1434_s29, %s1435_s30  }
   0x9   :  { %1427 = dma.done.wait [#allocation5], 512  }
   0xa   :  { %1428 = vsyncadd [#allocation5], 4294966784 }
   0xb   :  { %1429 = dma.done.wait [#allocation8], 512  }
   0xc   :  { %1430 = vsyncadd [#allocation8], 4294966784  ;;  %v1437_v0 = vmov 0   ;;  %vm104_vm0 = vcmask 1041408   ;;  %v74_v1 = vld [vmem:[%s1903_s0] sm:$0xff]  ;;  %v95_v3 = vld [vmem:[%s1904_s1 + $0x28] sm:$0xff]  ;;  %v76_v19 = vlaneseq }
   0xd   :  { %1287 = vset.pattern.permute.xlu0 %v1437_v0  ;;  %v96_v2 = vld [vmem:[%s1904_s1 + $0x30] sm:$0x3]  ;;  %v94_v4 = vld [vmem:[%s1904_s1 + $0x20] sm:$0xff]  ;;  %v93_v5 = vld [vmem:[%s1904_s1 + $0x18] sm:$0xff]  ;;  %v1438_v18 = vmov 0.0   ;;  %vm97_vm1 = vcmask 408576  }
   0xe   :  { %79 = vperm.xlu0 %1287, %v74_v1   ;;  %1241 = vmatpush.msk.msra.mxu0 %vm104_vm0, %v96_v2  ;;  %v75_v6 = vld [vmem:[%s1903_s0 + $0x8] sm:$0xff]  ;;  %v92_v7 = vld [vmem:[%s1904_s1 + $0x10] sm:$0xff]  ;;  %v90_v9 = vld [vmem:[%s1904_s1] sm:$0xff]  ;;  %v77_v20 = vand.u32 127, %v76_v19  ;;  %vm139_vm4 = vcmask 261120   ;;  %vm169_vm5 = vcmask 523264  }
   0xf   :  { %v91_v8 = vld [vmem:[%s1904_s1 + $0x8] sm:$0xff]  ;;  %v1543_v10 = vld [vmem:[%s1907_s4 + $0x18] sm:$0xff]  ;;  %v1548_v11 = vld [vmem:[%s1907_s4 + $0x10] sm:$0xff]  ;;  %vm233_vm6 = vcmask 254976   ;;  %vm235_vm7 = vcmask 517376   ;;  %s1441_s20 = smov [#allocation9]  }
  0x10   :  { %118 = vmatpush.msra.mxu0 %v95_v3  ;;  %219 = vmatpush.msra.mxu3 %v1543_v10  ;;  %v134_v12 = vld [vmem:[%s1905_s2 + $0x18] sm:$0xff]  ;;  %v133_v13 = vld [vmem:[%s1905_s2 + $0x10] sm:$0xff]  ;;  %v1561_v14 = vld [vmem:[%s1907_s4 + $0x8] sm:$0xff]  ;;  %s1228_s23 = sshll.u32 %s1915_s12, 4  ;;  %vm1219_vm8 = vcmask 25600   ;;  %s1229_s23 = int_to_ptr.hbm [resolvable:$true] %s1228_s23 }
  0x11   :  { %158 = vmatpush.msra.mxu1 %v134_v12  ;;  %v1566_v15 = vld [vmem:[%s1906_s3 + $0x18] sm:$0xff]  ;;  %v132_v16 = vld [vmem:[%s1905_s2 + $0x8] sm:$0xff]  ;;  %v1576_v17 = vld [vmem:[%s1907_s4] sm:$0xff] }
  0x12   :  { %119 = vmatpush.msra.mxu0 %v94_v4  ;;  %220 = vmatpush.msra.mxu3 %v1548_v11  ;;  %v131_v25 = vld [vmem:[%s1905_s2] sm:$0xff]  ;;  %v1601_v26 = vld [vmem:[%s1906_s3 + $0x10] sm:$0xff]  ;;  %v1607_v27 = vld [vmem:[%s1906_s3 + $0x8] sm:$0xff]  ;;  %s1439_s2 = smov 32  }
  0x13   :  { %196 = vmatpush.msra.mxu2 %v1566_v15  ;;  %159 = vmatpush.msra.mxu1 %v133_v13  ;;  %v1612_v28 = vld [vmem:[%s1906_s3] sm:$0xff] }
  0x14   :  { %120 = vmatpush.msra.mxu0 %v93_v5  ;;  %221 = vmatpush.msra.mxu3 %v1561_v14  ;;  %v1288_v32 = vld [vmem:[%s1908_s5] ss:$0 sm:$0xff]  ;;  %s1440_s5 = smov 96  }
  0x15   :  { %160 = vmatpush.msra.mxu1 %v132_v16  ;;  %197 = vmatpush.msra.mxu2 %v1601_v26 }
  0x16   :  { %82 = vperm.xlu0 %1287, %v75_v6   ;;  %121 = vmatpush.msra.mxu0 %v92_v7 }
  0x17   :  { %222 = vmatpush.msra.mxu3 %v1576_v17  ;;  %161 = vmatpush.msra.mxu1 %v131_v25 }
  0x18   :  { %122 = vmatpush.msra.mxu0 %v91_v8  ;;  %223 = vmatmul.f32.vlgmr.msra.gmra.mxu3 %v1438_v18 }
  0x19   :  { %281 = vmatpush.msrb.mxu3 %v1543_v10  ;;  %313 = vmatpush.msrb.mxu1 %v1566_v15 }
  0x1a   :  { %123 = vmatpush.msra.mxu0 %v90_v9  ;;  %198 = vmatpush.msra.mxu2 %v1607_v27 }
  0x1b   :  { %282 = vmatpush.msrb.mxu3 %v1548_v11  ;;  %314 = vmatpush.msrb.mxu1 %v1601_v26 }
  0x1c   :  { %401 = vmatpush.msrb.mxu0 %v1543_v10  ;;  %199 = vmatpush.msra.mxu2 %v1612_v28 }
  0x1d   :  { %283 = vmatpush.msrb.mxu3 %v1561_v14  ;;  %200 = vmatmul.f32.vlgmr.msra.gmra.mxu2 %v1438_v18 }
  0x1e   :  { %402 = vmatpush.msrb.mxu0 %v1548_v11  ;;  %315 = vmatpush.msrb.mxu1 %v1607_v27 }
  0x1f   :  { %284 = vmatpush.msrb.mxu3 %v1576_v17  ;;  %253 = vmatpush.msrb.mxu2 %v1566_v15 }
  0x20   :  { %403 = vmatpush.msrb.mxu0 %v1561_v14  ;;  %316 = vmatpush.msrb.mxu1 %v1612_v28 }
  0x21   :  { %373 = vmatpush.msra.mxu3 %v1566_v15  ;;  %254 = vmatpush.msrb.mxu2 %v1601_v26 }
  0x22   :  { %404 = vmatpush.msrb.mxu0 %v1576_v17 }
  0x23   :  { %374 = vmatpush.msra.mxu3 %v1601_v26  ;;  %255 = vmatpush.msrb.mxu2 %v1607_v27 }
  0x25   :  { %375 = vmatpush.msra.mxu3 %v1607_v27  ;;  %256 = vmatpush.msrb.mxu2 %v1612_v28 }
  0x27   :  { %376 = vmatpush.msra.mxu3 %v1612_v28  ;;  %341 = vmatpush.msra.mxu2 %v1543_v10 }
  0x29   :  { %342 = vmatpush.msra.mxu2 %v1548_v11 }
  0x2b   :  { %343 = vmatpush.msra.mxu2 %v1561_v14 }
  0x2d   :  { %344 = vmatpush.msra.mxu2 %v1576_v17 }
  0x80   :  { %v80_v21 = vpop.permute.xlu0 %79 }
  0x81   :  { %vm84_vm2 = vcmp.eq.s32.totalorder %v80_v21, %v77_v20 }
  0x82   :  { %v1239_v22 = vsel %vm84_vm2, 1.0, %v1438_v18 }
  0x83   :  { %1242 = vmatmul.msk.f32.vlgmr.msra.gmra.mxu0 %vm97_vm1, %v1239_v22 }
  0x84   :  { %521 = vmatpush.msra.mxu0 %v1543_v10 }
  0x86   :  { %522 = vmatpush.msra.mxu0 %v1548_v11 }
  0x88   :  { %v83_v23 = vpop.permute.xlu0 %82  ;;  %523 = vmatpush.msra.mxu0 %v1561_v14 }
  0x89   :  { %vm85_vm3 = vcmp.eq.s32.totalorder %v83_v23, %v77_v20 }
  0x8a   :  { %v1240_v24 = vsel %vm85_vm3, 1.0, %v1438_v18  ;;  %524 = vmatpush.msra.mxu0 %v1576_v17 }
  0x8b   :  { %1243 = vmatmul.msk.f32.gmra.mxu0 %vm97_vm1, %v1240_v24 }
  0x9b   :  { %v224_v29 = vpop.f32.mrf.mxu3 }
  0x9c   :  { %228 = vrot.lane.b32.xlu1 %v224_v29, %s1439_s2 }
  0xa0   :  { %v201_v36 = vpop.f32.mrf.mxu2 }
 0x100   :  { %v125_v30 = vpop.f32.mrf.mxu0 }
 0x101   :  { %1244 = vmatmul.msk.f32.vlgmr.msra.gmra.mxu1 %vm139_vm4, %v125_v30 }
 0x102   :  { %433 = vmatpush.msra.mxu1 %v1566_v15 }
 0x104   :  { %434 = vmatpush.msra.mxu1 %v1601_v26 }
 0x106   :  { %435 = vmatpush.msra.mxu1 %v1607_v27 }
 0x108   :  { %v128_v31 = vpop.f32.mrf.mxu0  ;;  %436 = vmatpush.msra.mxu1 %v1612_v28 }
 0x109   :  { %1245 = vmatmul.msk.f32.gmra.mxu1 %vm139_vm4, %v128_v31 }
 0x10e   :  { %v229_v40 = vpop.permute.xlu1 %228 }
 0x17e   :  { %v163_v33 = vpop.f32.mrf.mxu1 }
 0x17f   :  { %v164_v34 = vadd.f32 %v1288_v32, %v163_v33 }
 0x181   :  { %170 = vst.msk [vmem:[#allocation2] sm:$0xff] %vm169_vm5, %v164_v34 }
 0x186   :  { %v166_v35 = vpop.f32.mrf.mxu1 }
 0x187   :  { %v167_v37 = vadd.f32 %v1288_v32, %v166_v35 }
 0x188   :  { %v180_v38 = vld [vmem:[#allocation2] sm:$0x3]  ;;  %v237_v46 = vld [vmem:[#allocation2 + $0x2] sm:$0x3]  ;;  %v297_v51 = vld [vmem:[#allocation2 + $0x4] sm:$0x3] }
 0x189   :  { %171 = vst.msk [vmem:[#allocation2 + $0x8] sm:$0xff] %vm169_vm5, %v167_v37  ;;  %v204_v39 = vadd.f32 %v201_v36, %v180_v38  ;;  %v357_v59 = vld [vmem:[#allocation2 + $0x6] sm:$0x3]  ;;  %v503_v36 = vld [vmem:[#allocation2 + $0x4] sm:$0x3] }
 0x18a   :  { %v443_v30 = vld [vmem:[#allocation2 + $0x6] sm:$0x3] }
 0x18b   :  { %1291 = vtanh.f32 %v204_v39 }
 0x190   :  { %v206_v41 = vld [vmem:[#allocation2 + $0xe] sm:$0x3]  ;;  %v263_v55 = vld [vmem:[#allocation2 + $0xc] sm:$0x3]  ;;  %v417_v0 = vld [vmem:[#allocation2 + $0x8] sm:$0x3] }
 0x191   :  { %v1292_v42 = vpop.eup %1291  ;;  %v231_v43 = vadd.f32 %v229_v40, %v206_v41  ;;  %v477_v5 = vld [vmem:[#allocation2 + $0xa] sm:$0x3]  ;;  %v537_v19 = vld [vmem:[#allocation2 + $0xc] sm:$0x3]  ;;  %v597_v24 = vld [vmem:[#allocation2 + $0xe] sm:$0x3] }
 0x192   :  { %234 = vst.msk [vmem:[#allocation3] sm:$0x3] %vm233_vm6, %v1292_v42  ;;  %1246 = vmatmul.msk.f32.vlgmr.msrb.gmra.mxu2 %vm139_vm4, %v1292_v42  ;;  %v323_v9 = vld [vmem:[#allocation2 + $0xa] sm:$0x3]  ;;  %v563_v42 = vld [vmem:[#allocation2 + $0x2] sm:$0x3] }
 0x193   :  { %1293 = vtanh.f32 %v231_v43  ;;  %461 = vmatpush.msrb.mxu2 %v1543_v10 }
 0x195   :  { %462 = vmatpush.msrb.mxu2 %v1548_v11 }
 0x197   :  { %463 = vmatpush.msrb.mxu2 %v1561_v14 }
 0x199   :  { %v1294_v44 = vpop.eup %1293  ;;  %464 = vmatpush.msrb.mxu2 %v1576_v17 }
 0x19a   :  { %236 = vst.msk [vmem:[#allocation3 + $0xe] sm:$0x3] %vm235_vm7, %v1294_v44  ;;  %265 = vrot.lane.b32.xlu1 %v1294_v44, %s1440_s5 }
 0x20c   :  { %v266_v45 = vpop.permute.xlu1 %265 }
 0x20d   :  { %1247 = vmatmul.msk.f32.vlgmr.msrb.gmra.mxu3 %vm139_vm4, %v266_v45 }
 0x20e   :  { %493 = vmatpush.msrb.mxu3 %v1566_v15 }
 0x210   :  { %494 = vmatpush.msrb.mxu3 %v1601_v26 }
 0x212   :  { %495 = vmatpush.msrb.mxu3 %v1607_v27 }
 0x214   :  { %496 = vmatpush.msrb.mxu3 %v1612_v28 }
 0x215   :  { %v258_v47 = vpop.f32.mrf.mxu2 }
 0x216   :  { %v261_v48 = vadd.f32 %v258_v47, %v237_v46  ;;  %v1710_v47 = vld [vmem:[#allocation7 + $0x18] sm:$0xff] }
 0x218   :  { %1295 = vtanh.f32 %v261_v48  ;;  %v1712_v48 = vld [vmem:[#allocation7 + $0x10] sm:$0xff] }
 0x21e   :  { %v1296_v49 = vpop.eup %1295 }
 0x21f   :  { %295 = vst.msk [vmem:[#allocation3 + $0x2] sm:$0x3] %vm233_vm6, %v1296_v49  ;;  %1248 = vmatmul.msk.f32.vlgmr.msrb.gmra.mxu1 %vm139_vm4, %v1296_v49  ;;  %v1715_v49 = vld [vmem:[#allocation7 + $0x8] sm:$0xff] }
 0x220   :  { %553 = vmatpush.msrb.mxu1 %v1566_v15 }
 0x222   :  { %554 = vmatpush.msrb.mxu1 %v1601_v26 }
 0x224   :  { %555 = vmatpush.msrb.mxu1 %v1607_v27 }
 0x226   :  { %556 = vmatpush.msrb.mxu1 %v1612_v28 }
 0x290   :  { %v286_v50 = vpop.f32.mrf.mxu3 }
 0x291   :  { %290 = vrot.lane.b32.xlu2 %v286_v50, %s1439_s2  ;;  %v1718_v50 = vld [vmem:[#allocation7] sm:$0xff] }
 0x29c   :  { %v318_v52 = vpop.f32.mrf.mxu1 }
 0x29d   :  { %v321_v53 = vadd.f32 %v318_v52, %v297_v51  ;;  %v666_v52 = vld [vmem:[%s1909_s6 + $0x38] sm:$0xff] }
 0x29f   :  { %1297 = vtanh.f32 %v321_v53  ;;  %v665_v53 = vld [vmem:[%s1909_s6 + $0x30] sm:$0xff] }
 0x2a5   :  { %v1298_v54 = vpop.eup %1297 }
 0x2a6   :  { %355 = vst.msk [vmem:[#allocation3 + $0x4] sm:$0x3] %vm233_vm6, %v1298_v54  ;;  %1250 = vmatmul.msk.f32.vlgmr.msra.gmra.mxu3 %vm139_vm4, %v1298_v54  ;;  %v664_v54 = vld [vmem:[%s1909_s6 + $0x28] sm:$0xff] }
 0x2a7   :  { %613 = vmatpush.msra.mxu3 %v1566_v15 }
 0x2a9   :  { %614 = vmatpush.msra.mxu3 %v1601_v26 }
 0x2ab   :  { %615 = vmatpush.msra.mxu3 %v1607_v27 }
 0x2ad   :  { %616 = vmatpush.msra.mxu3 %v1612_v28 }
 0x2eb   :  { %v291_v56 = vpop.permute.xlu2 %290 }
 0x2ec   :  { %v293_v57 = vadd.f32 %v291_v56, %v263_v55  ;;  %v663_v55 = vld [vmem:[%s1909_s6 + $0x20] sm:$0xff]  ;;  %v662_v56 = vld [vmem:[%s1909_s6 + $0x18] sm:$0xff] }
 0x2ee   :  { %1299 = vtanh.f32 %v293_v57  ;;  %v1739_v57 = vld [vmem:[#allocation4 + $0x18] sm:$0xff] }
 0x2f4   :  { %v1300_v58 = vpop.eup %1299 }
 0x2f5   :  { %296 = vst.msk [vmem:[#allocation3 + $0xc] sm:$0x3] %vm235_vm7, %v1300_v58  ;;  %325 = vrot.lane.b32.xlu2 %v1300_v58, %s1440_s5  ;;  %v661_v58 = vld [vmem:[%s1909_s6 + $0x10] sm:$0xff] }
 0x329   :  { %v378_v60 = vpop.f32.mrf.mxu3 }
 0x32a   :  { %v381_v61 = vadd.f32 %v378_v60, %v357_v59  ;;  %v1745_v59 = vld [vmem:[#allocation4 + $0x10] sm:$0xff]  ;;  %v660_v60 = vld [vmem:[%s1909_s6 + $0x8] sm:$0xff] }
 0x32c   :  { %1301 = vtanh.f32 %v381_v61  ;;  %v659_v61 = vld [vmem:[%s1909_s6] sm:$0xff] }
 0x332   :  { %v1302_v62 = vpop.eup %1301 }
 0x333   :  { %415 = vst.msk [vmem:[#allocation3 + $0x6] sm:$0x3] %vm233_vm6, %v1302_v62  ;;  %1252 = vmatmul.msk.f32.vlgmr.msra.gmra.mxu1 %vm139_vm4, %v1302_v62  ;;  %v1758_v62 = vld [vmem:[#allocation4 + $0x8] sm:$0xff] }
 0x334   :  { %685 = vmatpush.msra.mxu1 %v666_v52 }
 0x336   :  { %686 = vmatpush.msra.mxu1 %v665_v53 }
 0x338   :  { %687 = vmatpush.msra.mxu1 %v664_v54 }
 0x33a   :  { %688 = vmatpush.msra.mxu1 %v663_v55 }
 0x33c   :  { %689 = vmatpush.msra.mxu1 %v662_v56 }
 0x33e   :  { %690 = vmatpush.msra.mxu1 %v661_v58 }
 0x340   :  { %691 = vmatpush.msra.mxu1 %v660_v60 }
 0x342   :  { %692 = vmatpush.msra.mxu1 %v659_v61 }
 0x34f   :  { %v326_v63 = vpop.permute.xlu2 %325 }
 0x350   :  { %1249 = vmatmul.msk.f32.vlgmr.msra.gmra.mxu2 %vm139_vm4, %v326_v63  ;;  %v1760_v63 = vld [vmem:[#allocation4] sm:$0xff] }
 0x351   :  { %581 = vmatpush.msra.mxu2 %v1543_v10 }
 0x353   :  { %582 = vmatpush.msra.mxu2 %v1548_v11 }
 0x355   :  { %583 = vmatpush.msra.mxu2 %v1561_v14 }
 0x357   :  { %584 = vmatpush.msra.mxu2 %v1576_v17 }
 0x3b0   :  { %v438_v1 = vpop.f32.mrf.mxu1 }
 0x3b1   :  { %v441_v2 = vadd.f32 %v438_v1, %v417_v0 }
 0x3b3   :  { %1303 = vtanh.f32 %v441_v2 }
 0x3b9   :  { %v1304_v3 = vpop.eup %1303 }
 0x3ba   :  { %1254 = vmatmul.msk.f32.vlgmr.msrb.gmra.mxu3 %vm139_vm4, %v1304_v3 }
 0x3bb   :  { %746 = vmatpush.msrb.mxu3 %v1710_v47 }
 0x3bd   :  { %747 = vmatpush.msrb.mxu3 %v1712_v48 }
 0x3bf   :  { %748 = vmatpush.msrb.mxu3 %v1715_v49 }
 0x3c1   :  { %749 = vmatpush.msrb.mxu3 %v1718_v50 }
 0x3d3   :  { %v346_v4 = vpop.f32.mrf.mxu2 }
 0x3d4   :  { %350 = vrot.lane.b32.xlu0 %v346_v4, %s1439_s2 }
 0x43d   :  { %v498_v6 = vpop.f32.mrf.mxu3 }
 0x43e   :  { %v501_v7 = vadd.f32 %v498_v6, %v477_v5  ;;  %v1289_v6 = vld [vmem:[%s1912_s9] ss:$0 sm:$0xff] }
 0x440   :  { %1305 = vtanh.f32 %v501_v7 }
 0x446   :  { %v1306_v8 = vpop.eup %1305  ;;  %v351_v12 = vpop.permute.xlu0 %350 }
 0x447   :  { %v353_v13 = vadd.f32 %v351_v12, %v323_v9  ;;  %1256 = vmatmul.msk.f32.vlgmr.msrb.gmra.mxu1 %vm139_vm4, %v1306_v8 }
 0x448   :  { %976 = vmatpush.msrb.mxu1 %v1710_v47 }
 0x449   :  { %1307 = vtanh.f32 %v353_v13 }
 0x44a   :  { %977 = vmatpush.msrb.mxu1 %v1712_v48 }
 0x44c   :  { %978 = vmatpush.msrb.mxu1 %v1715_v49 }
 0x44e   :  { %979 = vmatpush.msrb.mxu1 %v1718_v50 }
 0x44f   :  { %v1308_v15 = vpop.eup %1307 }
 0x450   :  { %356 = vst.msk [vmem:[#allocation3 + $0xa] sm:$0x3] %vm235_vm7, %v1308_v15  ;;  %385 = vrot.lane.b32.xlu1 %v1308_v15, %s1440_s5 }
 0x451   :  { %535 = vst.msk [vmem:[#allocation3 + $0xa] sm:$0x3] %vm233_vm6, %v1306_v8 }
 0x4c2   :  { %v386_v16 = vpop.permute.xlu1 %385 }
 0x4c3   :  { %1251 = vmatmul.msk.f32.vlgmr.msrb.gmra.mxu0 %vm139_vm4, %v386_v16 }
 0x4c4   :  { %v558_v20 = vpop.f32.mrf.mxu1  ;;  %641 = vmatpush.msrb.mxu0 %v1543_v10 }
 0x4c5   :  { %v561_v21 = vadd.f32 %v558_v20, %v537_v19 }
 0x4c6   :  { %642 = vmatpush.msrb.mxu0 %v1548_v11  ;;  %v383_v11 = vld [vmem:[#allocation2 + $0x8] sm:$0x3] }
 0x4c7   :  { %1309 = vtanh.f32 %v561_v21 }
 0x4c8   :  { %643 = vmatpush.msrb.mxu0 %v1561_v14 }
 0x4ca   :  { %644 = vmatpush.msrb.mxu0 %v1576_v17 }
 0x4cd   :  { %v1310_v22 = vpop.eup %1309 }
 0x4ce   :  { %595 = vst.msk [vmem:[#allocation3 + $0xc] sm:$0x3] %vm233_vm6, %v1310_v22  ;;  %1258 = vmatmul.msk.f32.vlgmr.msra.gmra.mxu3 %vm139_vm4, %v1310_v22 }
 0x4cf   :  { %834 = vmatpush.msra.mxu3 %v1739_v57 }
 0x4d1   :  { %835 = vmatpush.msra.mxu3 %v1745_v59 }
 0x4d3   :  { %836 = vmatpush.msra.mxu3 %v1758_v62 }
 0x4d5   :  { %837 = vmatpush.msra.mxu3 %v1760_v63 }
 0x4d6   :  { %750 = vmatmul.f32.vlgmr.msrb.gmra.mxu3 %v1438_v18 }
 0x4d7   :  { %920 = vmatpush.msrb.mxu3 %v1710_v47 }
 0x4d9   :  { %921 = vmatpush.msrb.mxu3 %v1712_v48 }
 0x4db   :  { %922 = vmatpush.msrb.mxu3 %v1715_v49 }
 0x4dd   :  { %923 = vmatpush.msrb.mxu3 %v1718_v50 }
 0x540   :  { %v406_v23 = vpop.f32.mrf.mxu0 }
 0x541   :  { %410 = vrot.lane.b32.xlu2 %v406_v23, %s1439_s2 }
 0x551   :  { %v618_v25 = vpop.f32.mrf.mxu3 }
 0x552   :  { %v621_v26 = vadd.f32 %v618_v25, %v597_v24 }
 0x554   :  { %1311 = vtanh.f32 %v621_v26 }
 0x559   :  { %v751_v0 = vpop.f32.mrf.mxu3 }
 0x55a   :  { %v1312_v10 = vpop.eup %1311 }
 0x55b   :  { %655 = vst.msk [vmem:[#allocation3 + $0xe] sm:$0x3] %vm233_vm6, %v1312_v10 }
 0x59b   :  { %v411_v27 = vpop.permute.xlu2 %410 }
 0x59c   :  { %v413_v14 = vadd.f32 %v411_v27, %v383_v11 }
 0x59e   :  { %1313 = vtanh.f32 %v413_v14 }
 0x5a4   :  { %v1314_v17 = vpop.eup %1313 }
 0x5a5   :  { %416 = vst.msk [vmem:[#allocation3 + $0x8] sm:$0x3] %vm235_vm7, %v1314_v17  ;;  %445 = vrot.lane.b32.xlu0 %v1314_v17, %s1440_s5 }
 0x5a6   :  { %475 = vst.msk [vmem:[#allocation3 + $0x8] sm:$0x3] %vm233_vm6, %v1304_v3 }
 0x5ad   :  { %v658_v5 = vld [vmem:[#allocation3 + $0x8] sm:$0xff] }
 0x617   :  { %v446_v28 = vpop.permute.xlu0 %445 }
 0x618   :  { %1253 = vmatmul.msk.f32.vlgmr.msrb.gmra.mxu2 %vm139_vm4, %v446_v28 }
 0x619   :  { %723 = vmatpush.msrb.mxu2 %v1739_v57 }
 0x61b   :  { %724 = vmatpush.msrb.mxu2 %v1745_v59 }
 0x61d   :  { %725 = vmatpush.msrb.mxu2 %v1758_v62 }
 0x61f   :  { %726 = vmatpush.msrb.mxu2 %v1760_v63 }
 0x69b   :  { %v466_v29 = vpop.f32.mrf.mxu2 }
 0x69c   :  { %470 = vrot.lane.b32.xlu1 %v466_v29, %s1439_s2 }
 0x70e   :  { %v471_v31 = vpop.permute.xlu1 %470 }
 0x70f   :  { %v473_v32 = vadd.f32 %v471_v31, %v443_v30 }
 0x711   :  { %1315 = vtanh.f32 %v473_v32 }
 0x717   :  { %v1316_v33 = vpop.eup %1315 }
 0x718   :  { %476 = vst.msk [vmem:[#allocation3 + $0x6] sm:$0x3] %vm235_vm7, %v1316_v33  ;;  %505 = vrot.lane.b32.xlu2 %v1316_v33, %s1440_s5 }
 0x772   :  { %v506_v34 = vpop.permute.xlu2 %505 }
 0x773   :  { %1255 = vmatmul.msk.f32.vlgmr.msra.gmra.mxu0 %vm139_vm4, %v506_v34 }
 0x774   :  { %776 = vmatpush.msra.mxu0 %v1739_v57 }
 0x776   :  { %777 = vmatpush.msra.mxu0 %v1745_v59 }
 0x778   :  { %778 = vmatpush.msra.mxu0 %v1758_v62 }
 0x77a   :  { %779 = vmatpush.msra.mxu0 %v1760_v63 }
 0x7f0   :  { %v526_v35 = vpop.f32.mrf.mxu0 }
 0x7f1   :  { %530 = vrot.lane.b32.xlu0 %v526_v35, %s1439_s2 }
 0x863   :  { %v531_v37 = vpop.permute.xlu0 %530 }
 0x864   :  { %v533_v38 = vadd.f32 %v531_v37, %v503_v36 }
 0x866   :  { %1317 = vtanh.f32 %v533_v38 }
 0x86c   :  { %v1318_v39 = vpop.eup %1317 }
 0x86d   :  { %536 = vst.msk [vmem:[#allocation3 + $0x4] sm:$0x3] %vm235_vm7, %v1318_v39  ;;  %565 = vrot.lane.b32.xlu1 %v1318_v39, %s1440_s5 }
 0x8df   :  { %v566_v40 = vpop.permute.xlu1 %565 }
 0x8e0   :  { %1257 = vmatmul.msk.f32.vlgmr.msra.gmra.mxu2 %vm139_vm4, %v566_v40 }
 0x8e1   :  { %804 = vmatpush.msra.mxu2 %v1710_v47 }
 0x8e3   :  { %805 = vmatpush.msra.mxu2 %v1712_v48 }
 0x8e5   :  { %806 = vmatpush.msra.mxu2 %v1715_v49 }
 0x8e7   :  { %807 = vmatpush.msra.mxu2 %v1718_v50 }
 0x8e8   :  { %727 = vmatmul.f32.vlgmr.msrb.gmra.mxu2 %v1438_v18  ;;  %v623_v18 = vld [vmem:[#allocation2] sm:$0x3] }
 0x8e9   :  { %892 = vmatpush.msrb.mxu2 %v1739_v57 }
 0x8eb   :  { %893 = vmatpush.msrb.mxu2 %v1745_v59 }
 0x8ed   :  { %894 = vmatpush.msrb.mxu2 %v1758_v62 }
 0x8ef   :  { %895 = vmatpush.msrb.mxu2 %v1760_v63 }
 0x963   :  { %v586_v41 = vpop.f32.mrf.mxu2 }
 0x964   :  { %590 = vrot.lane.b32.xlu2 %v586_v41, %s1439_s2 }
 0x96b   :  { %v728_v12 = vpop.f32.mrf.mxu2 }
 0x96c   :  { %755 = vrot.lane.b32.xlu2 %v751_v0, %s1439_s2 }
 0x9be   :  { %v591_v43 = vpop.permute.xlu2 %590 }
 0x9bf   :  { %v593_v44 = vadd.f32 %v591_v43, %v563_v42 }
 0x9c1   :  { %1319 = vtanh.f32 %v593_v44 }
 0x9c6   :  { %v756_v19 = vpop.permute.xlu2 %755 }
 0x9c7   :  { %v1320_v45 = vpop.eup %1319 }
 0x9c8   :  { %596 = vst.msk [vmem:[#allocation3 + $0x2] sm:$0x3] %vm235_vm7, %v1320_v45  ;;  %625 = vrot.lane.b32.xlu0 %v1320_v45, %s1440_s5 }
 0xa3a   :  { %v626_v46 = vpop.permute.xlu0 %625 }
 0xa3b   :  { %1259 = vmatmul.msk.f32.vlgmr.msrb.gmra.mxu0 %vm139_vm4, %v626_v46 }
 0xa3c   :  { %862 = vmatpush.msrb.mxu0 %v1710_v47 }
 0xa3e   :  { %863 = vmatpush.msrb.mxu0 %v1712_v48 }
 0xa40   :  { %864 = vmatpush.msrb.mxu0 %v1715_v49 }
 0xa42   :  { %865 = vmatpush.msrb.mxu0 %v1718_v50 }
 0xab8   :  { %v646_v51 = vpop.f32.mrf.mxu0 }
 0xab9   :  { %650 = vrot.lane.b32.xlu1 %v646_v51, %s1439_s2 }
 0xb2b   :  { %v651_v1 = vpop.permute.xlu1 %650 }
 0xb2c   :  { %v653_v2 = vadd.f32 %v651_v1, %v623_v18 }
 0xb2e   :  { %1321 = vtanh.f32 %v653_v2 }
 0xb34   :  { %v1322_v3 = vpop.eup %1321 }
 0xb35   :  { %656 = vst.msk [vmem:[#allocation3] sm:$0x3] %vm235_vm7, %v1322_v3 }
 0xb3c   :  { %v657_v4 = vld [vmem:[#allocation3] sm:$0xff] }
 0xb3d   :  { %1260 = vmatmul.msk.f32.vlgmr.msra.gmra.mxu1 %vm169_vm5, %v657_v4  ;;  %v1161_v4 = vld [vmem:[%s1913_s10 + $0x18] sm:$0xff] }
 0xb3e   :  { %1088 = vmatpush.msra.mxu1 %v1710_v47 }
 0xb40   :  { %1089 = vmatpush.msra.mxu1 %v1712_v48 }
 0xb42   :  { %1090 = vmatpush.msra.mxu1 %v1715_v49 }
 0xb44   :  { %1091 = vmatpush.msra.mxu1 %v1718_v50 }
 0xb45   :  { %1261 = vmatmul.msk.f32.gmra.mxu1 %vm169_vm5, %v658_v5  ;;  %v1160_v5 = vld [vmem:[%s1913_s10 + $0x10] sm:$0xff] }
 0xbba   :  { %v694_v7 = vpop.f32.mrf.mxu1 }
 0xbbb   :  { %v695_v8 = vadd.f32 %v1289_v6, %v694_v7  ;;  %v1158_v7 = vld [vmem:[%s1913_s10] sm:$0xff] }
 0xbbd   :  { %700 = vst.msk [vmem:[#allocation2] sm:$0xff] %vm169_vm5, %v695_v8 }
 0xbc2   :  { %v697_v9 = vpop.f32.mrf.mxu1 }
 0xbc3   :  { %v698_v13 = vadd.f32 %v1289_v6, %v697_v9  ;;  %v1159_v6 = vld [vmem:[%s1913_s10 + $0x8] sm:$0xff] }
 0xbc4   :  { %v1801_v15 = vld [vmem:[#allocation2] sm:$0x3]  ;;  %v1816_v25 = vld [vmem:[#allocation2 + $0x2] sm:$0x3]  ;;  %v1828_v14 = vld [vmem:[#allocation2 + $0x4] sm:$0x3] }
 0xbc5   :  { %701 = vst.msk [vmem:[#allocation2 + $0x8] sm:$0xff] %vm169_vm5, %v698_v13  ;;  %v731_v16 = vadd.f32 %v728_v12, %v1801_v15  ;;  %v876_v35 = vld [vmem:[#allocation2 + $0x6] sm:$0x3] }
 0xbc7   :  { %1323 = vtanh.f32 %v731_v16 }
 0xbcc   :  { %v1805_v20 = vld [vmem:[#allocation2 + $0xe] sm:$0x3]  ;;  %v786_v30 = vld [vmem:[#allocation2 + $0xc] sm:$0x3]  ;;  %v902_v40 = vld [vmem:[#allocation2 + $0x8] sm:$0x3] }
 0xbcd   :  { %v1324_v21 = vpop.eup %1323  ;;  %v758_v22 = vadd.f32 %v756_v19, %v1805_v20  ;;  %v844_v44 = vld [vmem:[#allocation2 + $0xa] sm:$0x3] }
 0xbce   :  { %1262 = vmatmul.msk.f32.vlgmr.msra.gmra.mxu0 %vm139_vm4, %v1324_v21 }
 0xbcf   :  { %1325 = vtanh.f32 %v758_v22  ;;  %949 = vmatpush.msra.mxu0 %v1739_v57 }
 0xbd1   :  { %950 = vmatpush.msra.mxu0 %v1745_v59 }
 0xbd3   :  { %951 = vmatpush.msra.mxu0 %v1758_v62 }
 0xbd5   :  { %v1326_v23 = vpop.eup %1325  ;;  %952 = vmatpush.msra.mxu0 %v1760_v63 }
 0xbd6   :  { %788 = vrot.lane.b32.xlu0 %v1326_v23, %s1440_s5 }
 0xc48   :  { %v789_v24 = vpop.permute.xlu0 %788 }
 0xc49   :  { %1263 = vmatmul.msk.f32.vlgmr.msra.gmra.mxu2 %vm139_vm4, %v789_v24  ;;  %v1165_v24 = vld [vmem:[%s1913_s10 + $0x38] sm:$0xff] }
 0xc4a   :  { %1005 = vmatpush.msra.mxu2 %v1739_v57 }
 0xc4b   :  { %v781_v26 = vpop.f32.mrf.mxu0 }
 0xc4c   :  { %v784_v10 = vadd.f32 %v781_v26, %v1816_v25  ;;  %1006 = vmatpush.msra.mxu2 %v1745_v59  ;;  %v1164_v26 = vld [vmem:[%s1913_s10 + $0x30] sm:$0xff] }
 0xc4e   :  { %1327 = vtanh.f32 %v784_v10  ;;  %1007 = vmatpush.msra.mxu2 %v1758_v62  ;;  %v1162_v10 = vld [vmem:[%s1913_s10 + $0x20] sm:$0xff] }
 0xc50   :  { %1008 = vmatpush.msra.mxu2 %v1760_v63 }
 0xc54   :  { %v1328_v11 = vpop.eup %1327 }
 0xc55   :  { %1264 = vmatmul.msk.f32.vlgmr.msra.gmra.mxu3 %vm139_vm4, %v1328_v11 }
 0xc56   :  { %1032 = vmatpush.msra.mxu3 %v1710_v47 }
 0xc58   :  { %1033 = vmatpush.msra.mxu3 %v1712_v48 }
 0xc5a   :  { %1034 = vmatpush.msra.mxu3 %v1715_v49 }
 0xc5c   :  { %1035 = vmatpush.msra.mxu3 %v1718_v50 }
 0xccc   :  { %v809_v27 = vpop.f32.mrf.mxu2 }
 0xccd   :  { %813 = vrot.lane.b32.xlu1 %v809_v27, %s1439_s2 }
 0xcd8   :  { %v839_v17 = vpop.f32.mrf.mxu3 }
 0xcd9   :  { %v842_v28 = vadd.f32 %v839_v17, %v1828_v14 }
 0xcdb   :  { %1329 = vtanh.f32 %v842_v28  ;;  %v1290_v28 = vld [vmem:[%s1914_s11] ss:$0 sm:$0xff] }
 0xce1   :  { %v1330_v29 = vpop.eup %1329 }
 0xce2   :  { %1266 = vmatmul.msk.f32.vlgmr.msrb.gmra.mxu2 %vm139_vm4, %v1330_v29 }
 0xce3   :  { %1117 = vmatpush.msrb.mxu2 %v1739_v57 }
 0xce5   :  { %1118 = vmatpush.msrb.mxu2 %v1745_v59 }
 0xce7   :  { %1119 = vmatpush.msrb.mxu2 %v1758_v62 }
 0xce9   :  { %1120 = vmatpush.msrb.mxu2 %v1760_v63 }
 0xd3f   :  { %v814_v31 = vpop.permute.xlu1 %813 }
 0xd40   :  { %v816_v32 = vadd.f32 %v814_v31, %v786_v30 }
 0xd42   :  { %1331 = vtanh.f32 %v816_v32 }
 0xd48   :  { %v1332_v33 = vpop.eup %1331 }
 0xd49   :  { %846 = vrot.lane.b32.xlu2 %v1332_v33, %s1440_s5 }
 0xd65   :  { %v897_v34 = vpop.f32.mrf.mxu2 }
 0xd66   :  { %v900_v36 = vadd.f32 %v897_v34, %v876_v35 }
 0xd68   :  { %1333 = vtanh.f32 %v900_v36 }
 0xd6e   :  { %v1334_v38 = vpop.eup %1333 }
 0xda3   :  { %v847_v37 = vpop.permute.xlu2 %846 }
 0xda4   :  { %1265 = vmatmul.msk.f32.vlgmr.msrb.gmra.mxu0 %vm139_vm4, %v847_v37 }
 0xda5   :  { %1061 = vmatpush.msrb.mxu0 %v1739_v57 }
 0xda7   :  { %1062 = vmatpush.msrb.mxu0 %v1745_v59 }
 0xda9   :  { %1063 = vmatpush.msrb.mxu0 %v1758_v62 }
 0xdab   :  { %1064 = vmatpush.msrb.mxu0 %v1760_v63 }
 0xdac   :  { %1268 = vmatmul.msk.f32.vlgmr.msra.gmra.mxu0 %vm139_vm4, %v1334_v38 }
 0xdad   :  { %1183 = vmatpush.msra.mxu0 %v1165_v24 }
 0xdaf   :  { %1184 = vmatpush.msra.mxu0 %v1164_v26 }
 0xe21   :  { %v867_v39 = vpop.f32.mrf.mxu0 }
 0xe22   :  { %871 = vrot.lane.b32.xlu0 %v867_v39, %s1439_s2 }
 0xe29   :  { %v954_v41 = vpop.f32.mrf.mxu0 }
 0xe2a   :  { %v957_v42 = vadd.f32 %v954_v41, %v902_v40 }
 0xe2c   :  { %1335 = vtanh.f32 %v957_v42 }
 0xe32   :  { %v1336_v43 = vpop.eup %1335 }
 0xe33   :  { %1270 = vmatmul.msk.f32.vlgmr.msra.gmra.mxu2 %vm139_vm4, %v1336_v43 }
 0xe94   :  { %v872_v45 = vpop.permute.xlu0 %871 }
 0xe95   :  { %v874_v46 = vadd.f32 %v872_v45, %v844_v44 }
 0xe97   :  { %1337 = vtanh.f32 %v874_v46 }
 0xe9d   :  { %v1338_v51 = vpop.eup %1337 }
 0xe9e   :  { %904 = vrot.lane.b32.xlu1 %v1338_v51, %s1440_s5 }
 0xeb6   :  { %v1010_v52 = vpop.f32.mrf.mxu2 }
 0xeb7   :  { %v1013_v53 = vadd.f32 %v1010_v52, %v844_v44 }
 0xeb9   :  { %1339 = vtanh.f32 %v1013_v53 }
 0xebf   :  { %v1340_v54 = vpop.eup %1339 }
 0xec0   :  { %1272 = vmatmul.msk.f32.vlgmr.msrb.gmra.mxu0 %vm139_vm4, %v1340_v54 }
 0xf10   :  { %v905_v55 = vpop.permute.xlu1 %904 }
 0xf11   :  { %1267 = vmatmul.msk.f32.vlgmr.msrb.gmra.mxu3 %vm139_vm4, %v905_v55 }
 0xf12   :  { %1144 = vmatpush.msrb.mxu3 %v1710_v47 }
 0xf14   :  { %1145 = vmatpush.msrb.mxu3 %v1712_v48 }
 0xf16   :  { %1146 = vmatpush.msrb.mxu3 %v1715_v49 }
 0xf18   :  { %1147 = vmatpush.msrb.mxu3 %v1718_v50 }
 0xf3d   :  { %v1066_v56 = vpop.f32.mrf.mxu0 }
 0xf3e   :  { %v1069_v57 = vadd.f32 %v1066_v56, %v786_v30 }
 0xf40   :  { %1341 = vtanh.f32 %v1069_v57 }
 0xf46   :  { %v1342_v58 = vpop.eup %1341 }
 0xf47   :  { %1274 = vmatmul.msk.f32.vlgmr.msrb.gmra.mxu2 %vm139_vm4, %v1342_v58 }
 0xf94   :  { %v925_v59 = vpop.f32.mrf.mxu3 }
 0xf95   :  { %929 = vrot.lane.b32.xlu2 %v925_v59, %s1439_s2 }
 0xfca   :  { %v1122_v8 = vpop.f32.mrf.mxu2 }
 0xfcb   :  { %v1125_v9 = vadd.f32 %v1122_v8, %v1805_v20 }
 0xfef   :  { %v930_v60 = vpop.permute.xlu2 %929 }
 0xff0   :  { %v932_v61 = vadd.f32 %v930_v60, %v902_v40 }
 0xff2   :  { %1343 = vtanh.f32 %v932_v61 }
 0xff8   :  { %v1344_v62 = vpop.eup %1343 }
 0xff9   :  { %960 = vrot.lane.b32.xlu0 %v1344_v62, %s1440_s5 }
0x106b   :  { %v961_v47 = vpop.permute.xlu0 %960 }
0x106c   :  { %1269 = vmatmul.msk.f32.vlgmr.msrb.gmra.mxu1 %vm139_vm4, %v961_v47 }
0x106d   :  { %1206 = vmatpush.msrb.mxu1 %v1161_v4 }
0x106f   :  { %1207 = vmatpush.msrb.mxu1 %v1160_v5 }
0x1071   :  { %1208 = vmatpush.msrb.mxu1 %v1159_v6 }
0x1073   :  { %1209 = vmatpush.msrb.mxu1 %v1158_v7 }
0x10e9   :  { %v981_v48 = vpop.f32.mrf.mxu1 }
0x10ea   :  { %985 = vrot.lane.b32.xlu1 %v981_v48, %s1439_s2 }
0x115c   :  { %v986_v49 = vpop.permute.xlu1 %985 }
0x115d   :  { %v988_v50 = vadd.f32 %v986_v49, %v876_v35 }
0x115f   :  { %1345 = vtanh.f32 %v988_v50 }
0x1165   :  { %v1346_v63 = vpop.eup %1345 }
0x1166   :  { %1016 = vrot.lane.b32.xlu2 %v1346_v63, %s1440_s5 }
0x11c0   :  { %v1017_v0 = vpop.permute.xlu2 %1016 }
0x11c1   :  { %1271 = vmatmul.msk.f32.vlgmr.msra.gmra.mxu3 %vm139_vm4, %v1017_v0 }
0x1244   :  { %v1037_v18 = vpop.f32.mrf.mxu3 }
0x1245   :  { %1041 = vrot.lane.b32.xlu0 %v1037_v18, %s1439_s2 }
0x12b7   :  { %v1042_v1 = vpop.permute.xlu0 %1041 }
0x12b8   :  { %v1044_v2 = vadd.f32 %v1042_v1, %v1828_v14 }
0x12ba   :  { %1347 = vtanh.f32 %v1044_v2 }
0x12bb   :  { %1349 = vtanh.f32 %v1125_v9 }
0x12c0   :  { %v1348_v3 = vpop.eup %1347 }
0x12c1   :  { %1072 = vrot.lane.b32.xlu1 %v1348_v3, %s1440_s5  ;;  %v1350_v13 = vpop.eup %1349 }
0x1333   :  { %v1073_v12 = vpop.permute.xlu1 %1072 }
0x1334   :  { %1273 = vmatmul.msk.f32.vlgmr.msra.gmra.mxu1 %vm139_vm4, %v1073_v12 }
0x133c   :  { %1277 = vmatmul.msk.f32.vlgmr.msrb.gmra.mxu1 %vm139_vm4, %v1350_v13 }
0x13b1   :  { %v1093_v16 = vpop.f32.mrf.mxu1 }
0x13b2   :  { %1097 = vrot.lane.b32.xlu2 %v1093_v16, %s1439_s2 }
0x13b9   :  { %v1211_v29 = vpop.f32.mrf.mxu1 }
0x140c   :  { %v1098_v19 = vpop.permute.xlu2 %1097 }
0x140d   :  { %v1100_v21 = vadd.f32 %v1098_v19, %v1816_v25  ;;  %v1163_v25 = vld [vmem:[%s1913_s10 + $0x28] sm:$0xff]  ;;  %s1226_s10 = sshll.u32 %s1441_s20, 4  ;;  %s1227_s10 = int_to_ptr.vmem [resolvable:$true] %s1226_s10 }
0x140e   :  { %1185 = vmatpush.msra.mxu0 %v1163_v25 }
0x140f   :  { %1351 = vtanh.f32 %v1100_v21 }
0x1410   :  { %1186 = vmatpush.msra.mxu0 %v1162_v10 }
0x1415   :  { %v1352_v22 = vpop.eup %1351 }
0x1416   :  { %1128 = vrot.lane.b32.xlu0 %v1352_v22, %s1440_s5 }
0x1488   :  { %v1129_v23 = vpop.permute.xlu0 %1128 }
0x1489   :  { %1275 = vmatmul.msk.f32.vlgmr.msrb.gmra.mxu3 %vm139_vm4, %v1129_v23 }
0x150c   :  { %v1149_v20 = vpop.f32.mrf.mxu3 }
0x150d   :  { %1153 = vrot.lane.b32.xlu1 %v1149_v20, %s1439_s2 }
0x157f   :  { %v1154_v11 = vpop.permute.xlu1 %1153 }
0x1580   :  { %v1156_v27 = vadd.f32 %v1154_v11, %v1801_v15 }
0x1582   :  { %1353 = vtanh.f32 %v1156_v27 }
0x1588   :  { %v1354_v14 = vpop.eup %1353 }
0x1589   :  { %1167 = vrot.lane.b32.xlu2 %v1354_v14, %s1440_s5 }
0x15e3   :  { %v1168_v17 = vpop.permute.xlu2 %1167 }
0x15e4   :  { %1276 = vmatmul.msk.f32.vlgmr.msra.gmra.mxu0 %vm139_vm4, %v1168_v17 }
0x1661   :  { %v1188_v30 = vpop.f32.mrf.mxu0 }
0x1662   :  { %v1212_v15 = vadd.f32 %v1211_v29, %v1188_v30 }
0x1664   :  { %v1218_v31 = vadd.f32 %v1290_v28, %v1212_v15 }
0x1666   :  { %1220 = vst.msk [vmem:[#allocation9] sm:$0x3] %vm1219_vm8, %v1218_v31 }
0x1667   :  { %1231 = dma.vmem_to_hbm [thread:$0]  %s1227_s10, 32, %s1229_s23, [#allocation6]  }
0x1668   :  { %1431 = dma.done.wait [#allocation6], 32  }
0x1669   :  { %1432 = vsyncadd [#allocation6], 4294967264 }
0x166a   :  { %1236 = vsyncpa [#allocation5], 1 }
0x166b   :  { %1237 = vsyncpa [#allocation8], 1 }
0x166c   :  { %1238 = vsyncpa [#allocation6], 1 }

</bundles_post_ra>
